<compile_context>
chip_gen: v7x
topology: tpu7x:2x2x1
jax: 0.10.0
libtpu: 0.0.40
codegen_flags: <defaults>
</compile_context>

<pallas_src>
import jax
import jax.numpy as jnp
from jax import lax
from jax.experimental import pallas as pl
from jax.experimental.pallas import tpu as pltpu


N_CLASSES = 8
N_CLASSES_PAD = 16          # pad folded label rows to a bf16 sublane tile
IMG_SHAPE = (1, 16, 16)
IMG_DIM = 1 * 16 * 16       # 256
HIDDEN = 512
BATCH = 8                   # per-sub-batch (real or fake)
LRELU_SLOPE = 0.2

# Row offsets inside the packed weight slab.
_W1_IMG_LO, _W1_IMG_HI = 0, IMG_DIM                       # [0, 256)
_W2_LO, _W2_HI = _W1_IMG_HI, _W1_IMG_HI + HIDDEN          # [256, 768)
_W3_LO, _W3_HI = _W2_HI, _W2_HI + HIDDEN                  # [768, 1280)
_W1_LBL_LO, _W1_LBL_HI = _W3_HI, _W3_HI + N_CLASSES_PAD   # [1280, 1296)
_SLAB_ROWS = _W1_LBL_HI                                   # 1296


def _leaky_relu(x):
    return jnp.where(x > 0, x, LRELU_SLOPE * x)


def discriminator_kernel(labels_ref, img_ref, w_ref, bias_ref, out_ref):
    # w_ref:    (1296, 512) bf16 packed weight slab (layout in header comment).
    # bias_ref: (5, 512)   f32: rows 0..2 = b1,b2,b3 ; row 3 = W4^T ; [4,0] = b4.
    labels = labels_ref[...]                               # (B, 1) int32
    b = labels.shape[0]

    # Embedding lookup as one-hot @ (emb @ W1_label) -- folded table, MXU path.
    # Padded one-hot width 16: labels < 8, extra columns always zero, padded
    # slab rows are zero, so the product is exact.
    class_iota = lax.broadcasted_iota(jnp.int32, (b, N_CLASSES_PAD), 1)
    one_hot = (labels == class_iota).astype(jnp.bfloat16)  # (B, 16)

    img = img_ref[...].astype(jnp.bfloat16)                # (B, 256)

    b1 = bias_ref[0:1, :]                                  # (1, 512) f32
    b2 = bias_ref[1:2, :]
    b3 = bias_ref[2:3, :]
    w4_row = bias_ref[3:4, :]                              # (1, 512) f32 (= W4^T)
    b4 = bias_ref[4:5, 0:1]                                # (1, 1)   f32

    # Layer 1: split first Linear (image part + folded label part), f32 accumulate.
    h = (
        jnp.dot(img, w_ref[_W1_IMG_LO:_W1_IMG_HI, :],
                preferred_element_type=jnp.float32)
        + jnp.dot(one_hot, w_ref[_W1_LBL_LO:_W1_LBL_HI, :],
                  preferred_element_type=jnp.float32)
        + b1
    )
    h = _leaky_relu(h)

    # Layer 2: Linear(512,512) -> (Dropout = identity) -> LeakyReLU
    h = jnp.dot(h.astype(jnp.bfloat16), w_ref[_W2_LO:_W2_HI, :],
                preferred_element_type=jnp.float32) + b2
    h = _leaky_relu(h)

    # Layer 3: Linear(512,512) -> (Dropout = identity) -> LeakyReLU
    h = jnp.dot(h.astype(jnp.bfloat16), w_ref[_W3_LO:_W3_HI, :],
                preferred_element_type=jnp.float32) + b3
    h = _leaky_relu(h)

    # Output: Linear(512, 1) as VPU multiply + lane reduction (no MXU pass,
    # no lane-sparse (512,1) weight tile).
    out_ref[...] = jnp.sum(h * w4_row, axis=-1, keepdims=True) + b4


def init_params(key):
    """Deterministic synthetic parameters matching the module's shapes."""
    def linear(key, fan_in, fan_out):
        kw, kb = jax.random.split(key)
        bound = 1.0 / jnp.sqrt(fan_in)
        w = jax.random.uniform(kw, (fan_in, fan_out), jnp.float32, -bound, bound)
        b = jax.random.uniform(kb, (fan_out,), jnp.float32, -bound, bound)
        return w, b

    keys = jax.random.split(key, 5)
    emb = jax.random.normal(keys[0], (N_CLASSES, N_CLASSES), jnp.float32)
    w1, b1 = linear(keys[1], IMG_DIM + N_CLASSES, HIDDEN)   # (264, 512)
    w2, b2 = linear(keys[2], HIDDEN, HIDDEN)
    w3, b3 = linear(keys[3], HIDDEN, HIDDEN)
    w4, b4 = linear(keys[4], HIDDEN, 1)
    return (emb, w1, b1, w2, b2, w3, b3, w4, b4)


def prepare_params(params):
    """One-time offline prep: single bf16 weight slab, folded embedding,
    packed biases + transposed W4."""
    emb, w1, b1, w2, b2, w3, b3, w4, b4 = params

    w1_img = w1[:IMG_DIM]                                   # (256, 512)
    w1_lbl = jnp.dot(emb, w1[IMG_DIM:])                     # (8, 512) folded
    w1_lbl_pad = jnp.zeros((N_CLASSES_PAD, HIDDEN), jnp.float32)
    w1_lbl_pad = w1_lbl_pad.at[:N_CLASSES].set(w1_lbl)      # (16, 512)

    w_slab = jnp.concatenate(
        [w1_img, w2, w3, w1_lbl_pad], axis=0).astype(jnp.bfloat16)  # (1296, 512)
    assert w_slab.shape == (_SLAB_ROWS, HIDDEN)

    bias_pack = jnp.zeros((5, HIDDEN), jnp.float32)
    bias_pack = bias_pack.at[0].set(b1)
    bias_pack = bias_pack.at[1].set(b2)
    bias_pack = bias_pack.at[2].set(b3)
    bias_pack = bias_pack.at[3].set(w4[:, 0])               # W4^T row (f32)
    bias_pack = bias_pack.at[4, 0].set(b4[0])
    return (w_slab, bias_pack)


@jax.jit
def discriminator_forward(img, labels, prepped):
    """Forward for any batch; batching multiple evaluations (e.g. real+fake)
    into one call amortizes the weight DMA and launch overhead."""
    batch = img.shape[0]
    img_flat = img.reshape(batch, -1)                       # img.view(B, -1)
    labels_2d = labels.reshape(batch, 1).astype(jnp.int32)
    w_slab, bias_pack = prepped
    args = (labels_2d, img_flat, w_slab, bias_pack)

    vmem_spec = pl.BlockSpec(memory_space=pltpu.MemorySpace.VMEM)
    validity = pl.pallas_call(
        discriminator_kernel,
        out_shape=jax.ShapeDtypeStruct((batch, 1), jnp.float32),
        in_specs=[vmem_spec] * len(args),
        out_specs=vmem_spec,
    )(*args)
    return validity


if __name__ == "__main__":
    key = jax.random.PRNGKey(0)
    kp, ki_real, ki_fake, kl_real, kl_fake = jax.random.split(key, 5)

    params = init_params(kp)
    prepped = prepare_params(params)

    # D(real) and D(fake) of a GAN step, fused into ONE pallas_call (B = 16).
    img_real = jax.random.normal(ki_real, (BATCH, *IMG_SHAPE), jnp.float32)
    img_fake = jax.random.normal(ki_fake, (BATCH, *IMG_SHAPE), jnp.float32)
    lbl_real = jax.random.randint(kl_real, (BATCH,), 0, N_CLASSES, jnp.int32)
    lbl_fake = jax.random.randint(kl_fake, (BATCH,), 0, N_CLASSES, jnp.int32)

    img = jnp.concatenate([img_real, img_fake], axis=0)     # (16, 1, 16, 16)
    labels = jnp.concatenate([lbl_real, lbl_fake], axis=0)  # (16,)

    validity = discriminator_forward(img, labels, prepped)
    jax.block_until_ready(validity)

    validity_real, validity_fake = validity[:BATCH], validity[BATCH:]
    assert validity.shape == (2 * BATCH, 1), validity.shape
    assert validity_real.shape == (BATCH, 1) and validity_fake.shape == (BATCH, 1)
    assert validity.dtype == jnp.float32
    assert bool(jnp.all(jnp.isfinite(validity)))
    print("KERNEL_OK")
</pallas_src>

<mosaic_0001>
module attributes {stable_mosaic.version = 11 : i64} {
  func.func @discriminator_kernel(%arg0: memref<16x1xi32, #tpu.memory_space<vmem>>, %arg1: memref<16x256xf32, #tpu.memory_space<vmem>>, %arg2: memref<1296x512xbf16, #tpu.memory_space<vmem>>, %arg3: memref<5x512xf32, #tpu.memory_space<vmem>>, %arg4: memref<16x1xf32, #tpu.memory_space<vmem>>) attributes {dimension_semantics = [], scalar_prefetch = 0 : i64, scratch_operands = 0 : i64, tpu.core_type = #tpu.core_type<tc>} {
    %c0 = arith.constant 0 : index
    %c0_0 = arith.constant 0 : index
    %0 = vector.load %arg0[%c0, %c0_0] : memref<16x1xi32, #tpu.memory_space<vmem>>, vector<16x1xi32>
    %1 = tpu.iota {dimensions = array<i32: 1>} : vector<16x16xi32>
    %2 = vector.broadcast %0 : vector<16x1xi32> to vector<16x16xi32>
    %3 = arith.cmpi eq, %2, %1 : vector<16x16xi32>
    %4 = arith.extui %3 : vector<16x16xi1> to vector<16x16xi32>
    %5 = arith.sitofp %4 : vector<16x16xi32> to vector<16x16xf32>
    %6 = arith.truncf %5 : vector<16x16xf32> to vector<16x16xbf16>
    %c0_1 = arith.constant 0 : index
    %c0_2 = arith.constant 0 : index
    %7 = vector.load %arg1[%c0_1, %c0_2] : memref<16x256xf32, #tpu.memory_space<vmem>>, vector<16x256xf32>
    %8 = arith.truncf %7 : vector<16x256xf32> to vector<16x256xbf16>
    %c0_3 = arith.constant 0 : index
    %c0_4 = arith.constant 0 : index
    %9 = vector.load %arg3[%c0_3, %c0_4] : memref<5x512xf32, #tpu.memory_space<vmem>>, vector<1x512xf32>
    %c1 = arith.constant 1 : index
    %c0_5 = arith.constant 0 : index
    %10 = vector.load %arg3[%c1, %c0_5] : memref<5x512xf32, #tpu.memory_space<vmem>>, vector<1x512xf32>
    %c2 = arith.constant 2 : index
    %c0_6 = arith.constant 0 : index
    %11 = vector.load %arg3[%c2, %c0_6] : memref<5x512xf32, #tpu.memory_space<vmem>>, vector<1x512xf32>
    %c3 = arith.constant 3 : index
    %c0_7 = arith.constant 0 : index
    %12 = vector.load %arg3[%c3, %c0_7] : memref<5x512xf32, #tpu.memory_space<vmem>>, vector<1x512xf32>
    %c4 = arith.constant 4 : index
    %c0_8 = arith.constant 0 : index
    %13 = vector.load %arg3[%c4, %c0_8] : memref<5x512xf32, #tpu.memory_space<vmem>>, vector<1x1xf32>
    %c0_9 = arith.constant 0 : index
    %c0_10 = arith.constant 0 : index
    %14 = vector.load %arg2[%c0_9, %c0_10] : memref<1296x512xbf16, #tpu.memory_space<vmem>>, vector<256x512xbf16>
    %cst = arith.constant dense<0.000000e+00> : vector<16x512xf32>
    %15 = tpu.matmul %8, %14, %cst {dimension_numbers = #tpu.dot_dimension_numbers<[1], [0], [0], [1], [0, 0, 1, 1], [], []>} : vector<16x256xbf16>, vector<256x512xbf16>, vector<16x512xf32> -> vector<16x512xf32>
    %c1280 = arith.constant 1280 : index
    %c0_11 = arith.constant 0 : index
    %16 = vector.load %arg2[%c1280, %c0_11] : memref<1296x512xbf16, #tpu.memory_space<vmem>>, vector<16x512xbf16>
    %cst_12 = arith.constant dense<0.000000e+00> : vector<16x512xf32>
    %17 = tpu.matmul %6, %16, %cst_12 {dimension_numbers = #tpu.dot_dimension_numbers<[1], [0], [0], [1], [0, 0, 1, 1], [], []>} : vector<16x16xbf16>, vector<16x512xbf16>, vector<16x512xf32> -> vector<16x512xf32>
    %18 = arith.addf %15, %17 : vector<16x512xf32>
    %19 = vector.broadcast %9 : vector<1x512xf32> to vector<16x512xf32>
    %20 = arith.addf %18, %19 : vector<16x512xf32>
    %cst_13 = arith.constant 0.000000e+00 : f32
    %21 = vector.broadcast %cst_13 : f32 to vector<16x512xf32>
    %22 = arith.cmpf ogt, %20, %21 : vector<16x512xf32>
    %cst_14 = arith.constant 2.000000e-01 : f32
    %23 = vector.broadcast %cst_14 : f32 to vector<16x512xf32>
    %24 = arith.mulf %23, %20 : vector<16x512xf32>
    %25 = arith.select %22, %20, %24 : vector<16x512xi1>, vector<16x512xf32>
    %26 = arith.truncf %25 : vector<16x512xf32> to vector<16x512xbf16>
    %c256 = arith.constant 256 : index
    %c0_15 = arith.constant 0 : index
    %27 = vector.load %arg2[%c256, %c0_15] : memref<1296x512xbf16, #tpu.memory_space<vmem>>, vector<512x512xbf16>
    %cst_16 = arith.constant dense<0.000000e+00> : vector<16x512xf32>
    %28 = tpu.matmul %26, %27, %cst_16 {dimension_numbers = #tpu.dot_dimension_numbers<[1], [0], [0], [1], [0, 0, 1, 1], [], []>} : vector<16x512xbf16>, vector<512x512xbf16>, vector<16x512xf32> -> vector<16x512xf32>
    %29 = vector.broadcast %10 : vector<1x512xf32> to vector<16x512xf32>
    %30 = arith.addf %28, %29 : vector<16x512xf32>
    %cst_17 = arith.constant 0.000000e+00 : f32
    %31 = vector.broadcast %cst_17 : f32 to vector<16x512xf32>
    %32 = arith.cmpf ogt, %30, %31 : vector<16x512xf32>
    %cst_18 = arith.constant 2.000000e-01 : f32
    %33 = vector.broadcast %cst_18 : f32 to vector<16x512xf32>
    %34 = arith.mulf %33, %30 : vector<16x512xf32>
    %35 = arith.select %32, %30, %34 : vector<16x512xi1>, vector<16x512xf32>
    %36 = arith.truncf %35 : vector<16x512xf32> to vector<16x512xbf16>
    %c768 = arith.constant 768 : index
    %c0_19 = arith.constant 0 : index
    %37 = vector.load %arg2[%c768, %c0_19] : memref<1296x512xbf16, #tpu.memory_space<vmem>>, vector<512x512xbf16>
    %cst_20 = arith.constant dense<0.000000e+00> : vector<16x512xf32>
    %38 = tpu.matmul %36, %37, %cst_20 {dimension_numbers = #tpu.dot_dimension_numbers<[1], [0], [0], [1], [0, 0, 1, 1], [], []>} : vector<16x512xbf16>, vector<512x512xbf16>, vector<16x512xf32> -> vector<16x512xf32>
    %39 = vector.broadcast %11 : vector<1x512xf32> to vector<16x512xf32>
    %40 = arith.addf %38, %39 : vector<16x512xf32>
    %cst_21 = arith.constant 0.000000e+00 : f32
    %41 = vector.broadcast %cst_21 : f32 to vector<16x512xf32>
    %42 = arith.cmpf ogt, %40, %41 : vector<16x512xf32>
    %cst_22 = arith.constant 2.000000e-01 : f32
    %43 = vector.broadcast %cst_22 : f32 to vector<16x512xf32>
    %44 = arith.mulf %43, %40 : vector<16x512xf32>
    %45 = arith.select %42, %40, %44 : vector<16x512xi1>, vector<16x512xf32>
    %46 = vector.broadcast %12 : vector<1x512xf32> to vector<16x512xf32>
    %47 = arith.mulf %45, %46 : vector<16x512xf32>
    %cst_23 = arith.constant dense<0.000000e+00> : vector<16xf32>
    %48 = vector.multi_reduction <add>, %47, %cst_23 [1] : vector<16x512xf32> to vector<16xf32>
    %49 = vector.shape_cast %48 : vector<16xf32> to vector<16x1xf32>
    %50 = vector.broadcast %13 : vector<1x1xf32> to vector<16x1xf32>
    %51 = arith.addf %49, %50 : vector<16x1xf32>
    %c0_24 = arith.constant 0 : index
    %c0_25 = arith.constant 0 : index
    %52 = vector.load %arg4[%c0_24, %c0_25] : memref<16x1xf32, #tpu.memory_space<vmem>>, vector<16x1xf32>
    tpu.vector_store %arg4[%c0_24, %c0_25], %51 {strides = array<i32>} : memref<16x1xf32, #tpu.memory_space<vmem>>, vector<16x1xf32>,
    return
  }
}

</mosaic_0001>

<bundles_post_ra>
// kernel: discriminator_forward.1
= control target key start
LH: loop header
LB: loop body
LE: loop exit
PB: predicated region body
PF: predicated region fallthrough
CT: control target
= control target key end

     0   :  { %9 = vsyncpa [#allocation3], 0  ;;  %s3768_s0 = inlined_call_operand.vmem [shape: s32[16,1], index: 0, kind: input, shape index: {}]   ;;  %s3769_s1 = inlined_call_operand.vmem [shape: f32[16,256], index: 1, kind: input, shape index: {}]   ;;  %s3770_s2 = inlined_call_operand.hbm [shape: bf16[1296,512], index: 2, kind: input, shape index: {}]   ;;  %s3771_s3 = inlined_call_operand.hbm [shape: f32[5,512], index: 3, kind: input, shape index: {}]   ;;  %s3772_s4 = inlined_call_operand.vmem [shape: f32[16,1], index: 4, kind: output, shape index: {}]  }
   0x1   :  { %10 = vsyncpa [#allocation5], 0  ;;  %s3649_s15 = smov [#allocation2]   ;;  %s3601_s19 = scalar_lea.hbm %s3770_s2, 41472 }
   0x2   :  { %s20_s16 = sshll.u32 %s3649_s15, 4  ;;  %p3602_p0 = scmp.ne.s32.totalorder %s3770_s2, %s3601_s19  ;;  %s21_s16 = int_to_ptr.vmem [resolvable:$true] %s20_s16 }
   0x3   :  { %p3605_p1 = scmp.lt.u32.totalorder %s3601_s19, %s3770_s2 }
   0x5   :  { %p3607_p2 = pnand %p3605_p1, %p3602_p0 }
   0x7   :  { %3610 = shalt.err (!%p3607_p2)
}
   0x8   :  { %s3611_s24 = scalar_lea.vmem %s21_s16, 41472  ;;  %p3616_p4 = scmp.lt.s32.totalorder %s21_s16, %s21_s16 }
   0x9   :  { %p3612_p3 = scmp.ne.s32.totalorder %s21_s16, %s3611_s24  ;;  %p3617_p5 = scmp.lt.s32.totalorder %s3611_s24, %s3611_s24 }
   0xb   :  { %p3618_p6 = por %p3617_p5, %p3616_p4 }
   0xd   :  { %p3619_p7 = pnand %p3618_p6, %p3612_p3 }
   0xf   :  { %3622 = shalt.err (!%p3619_p7)
}
  0x10   :  { %s3650_s25 = smov 256   ;;  %s3651_s26 = smov 16  }
  0x11   :  { %26 = dma.hbm_to_vmem [thread:$0]  %s3770_s2, 41472, %s21_s16, [#allocation3], %s3650_s25, %s3650_s25, %s3651_s26  }
  0x12   :  { %s3652_s29 = smov [#allocation4]   ;;  %s3623_s7 = scalar_lea.hbm %s3771_s3, 512 }
  0x13   :  { %s33_s30 = sshll.u32 %s3652_s29, 4  ;;  %p3624_p8 = scmp.ne.s32.totalorder %s3771_s3, %s3623_s7  ;;  %s34_s30 = int_to_ptr.vmem [resolvable:$true] %s33_s30 }
  0x14   :  { %p3627_p9 = scmp.lt.u32.totalorder %s3623_s7, %s3771_s3 }
  0x16   :  { %p3629_p10 = pnand %p3627_p9, %p3624_p8 }
  0x18   :  { %3632 = shalt.err (!%p3629_p10)
}
  0x19   :  { %s3633_s12 = scalar_lea.vmem %s34_s30, 512  ;;  %p3638_p12 = scmp.lt.s32.totalorder %s34_s30, %s34_s30 }
  0x1a   :  { %p3634_p11 = scmp.ne.s32.totalorder %s34_s30, %s3633_s12  ;;  %p3639_p13 = scmp.lt.s32.totalorder %s3633_s12, %s3633_s12 }
  0x1c   :  { %p3640_p0 = por %p3639_p13, %p3638_p12 }
  0x1e   :  { %p3641_p1 = pnand %p3640_p0, %p3634_p11 }
  0x20   :  { %3644 = shalt.err (!%p3641_p1)
}
  0x21   :  { %36 = dma.hbm_to_vmem [thread:$0]  %s3771_s3, 512, %s34_s30, [#allocation5]  }
  0x22   :  { %3645 = dma.done.wait [#allocation3], 41472  }
  0x23   :  { %3646 = vsyncadd [#allocation3], 4294925824 }
  0x24   :  { %3647 = dma.done.wait [#allocation5], 512  }
  0x25   :  { %3648 = vsyncadd [#allocation5], 4294966784  ;;  %v3653_v0 = vmov 0   ;;  %v44_v1 = vld [vmem:[%s3768_s0] sm:$0xff]  ;;  %v45_v2 = vld [vmem:[%s3768_s0 + $0x8] sm:$0xff]  ;;  %v46_v9 = vlaneseq  ;;  %v3654_v19 = vmov 0.0  }
  0x26   :  { %3114 = vset.pattern.permute.xlu0 %v3653_v0  ;;  %199 = vmatprep.mubr.bf16.mxu0 %v3653_v0  ;;  %v3115_v3 = vld [vmem:[#allocation2 + $0xa04] ss:$16 sps:$4 sm:$0xff]   ;;  %v3117_v4 = vld [vmem:[#allocation2 + $0xa0c] ss:$16 sps:$4 sm:$0xff]   ;;  %v3119_v5 = vld [vmem:[#allocation2 + $0xa00] ss:$16 sps:$4 sm:$0xff]  }
  0x27   :  { %242 = vmatprep.mubr.bf16.mxu1 %v3653_v0  ;;  %49 = vperm.xlu0 %3114, %v44_v1   ;;  %v3120_v6 = vld [vmem:[#allocation2 + $0xa08] ss:$16 sps:$4 sm:$0xff]   ;;  %v3123_v7 = vld [vmem:[#allocation2 + $0x4] ss:$16 sps:$4 sm:$0xff]   ;;  %v3126_v8 = vld [vmem:[#allocation2 + $0xc] ss:$16 sps:$4 sm:$0xff]  }
  0x28   :  { %167 = vmatprep.subr.bf16.mxu0 %v3115_v3  ;;  %210 = vmatprep.subr.bf16.mxu1 %v3117_v4  ;;  %v47_v10 = vand.u32 127, %v46_v9  ;;  %v62_v12 = vld [vmem:[%s3769_s1 + $0x8] sm:$0xff]  ;;  %v64_v13 = vld [vmem:[%s3769_s1 + $0x18] sm:$0xff]  ;;  %v3121_v15 = vld [vmem:[#allocation2] ss:$16 sps:$4 sm:$0xff]   ;;  %vm163_vm2 = vcmask 130048  }
  0x29   :  { %168 = vmatpush1.bf16.msra.mxu0 %v3119_v5  ;;  %211 = vmatpush1.bf16.msra.mxu1 %v3120_v6  ;;  %v3124_v16 = vld [vmem:[#allocation2 + $0x8] ss:$16 sps:$4 sm:$0xff]   ;;  %v3129_v17 = vld [vmem:[#allocation2 + $0x24] ss:$16 sps:$4 sm:$0xff]   ;;  %v3132_v18 = vld [vmem:[#allocation2 + $0x2c] ss:$16 sps:$4 sm:$0xff]   ;;  %v66_v25 = vpack.c.bf16 %v64_v13, %v62_v12 }
  0x2a   :  { %573 = vmatprep.subr.bf16.mxu0 %v3123_v7  ;;  %616 = vmatprep.subr.bf16.mxu1 %v3126_v8  ;;  %v3127_v23 = vld [vmem:[#allocation2 + $0x20] ss:$16 sps:$4 sm:$0xff]   ;;  %v3130_v24 = vld [vmem:[#allocation2 + $0x28] ss:$16 sps:$4 sm:$0xff]   ;;  %v3135_v26 = vld [vmem:[#allocation2 + $0x44] ss:$16 sps:$4 sm:$0xff]  }
  0x2b   :  { %52 = vperm.xlu0 %3114, %v45_v2   ;;  %v3138_v27 = vld [vmem:[#allocation2 + $0x4c] ss:$16 sps:$4 sm:$0xff]   ;;  %v3133_v28 = vld [vmem:[#allocation2 + $0x40] ss:$16 sps:$4 sm:$0xff]   ;;  %v3136_v29 = vld [vmem:[#allocation2 + $0x48] ss:$16 sps:$4 sm:$0xff]  }
  0x2c   :  { %v3141_v30 = vld [vmem:[#allocation2 + $0x64] ss:$16 sps:$4 sm:$0xff]   ;;  %v3144_v31 = vld [vmem:[#allocation2 + $0x6c] ss:$16 sps:$4 sm:$0xff]   ;;  %v3139_v32 = vld [vmem:[#allocation2 + $0x60] ss:$16 sps:$4 sm:$0xff]  }
  0x2d   :  { %v3142_v33 = vld [vmem:[#allocation2 + $0x68] ss:$16 sps:$4 sm:$0xff]   ;;  %v3147_v34 = vld [vmem:[#allocation2 + $0x84] ss:$16 sps:$4 sm:$0xff]   ;;  %v3150_v35 = vld [vmem:[#allocation2 + $0x8c] ss:$16 sps:$4 sm:$0xff]  }
  0x2e   :  { %v3145_v36 = vld [vmem:[#allocation2 + $0x80] ss:$16 sps:$4 sm:$0xff]   ;;  %v3148_v37 = vld [vmem:[#allocation2 + $0x88] ss:$16 sps:$4 sm:$0xff]   ;;  %v3153_v38 = vld [vmem:[#allocation2 + $0xa4] ss:$16 sps:$4 sm:$0xff]  }
  0x2f   :  { %v3156_v39 = vld [vmem:[#allocation2 + $0xac] ss:$16 sps:$4 sm:$0xff]   ;;  %v3151_v40 = vld [vmem:[#allocation2 + $0xa0] ss:$16 sps:$4 sm:$0xff]   ;;  %v3154_v41 = vld [vmem:[#allocation2 + $0xa8] ss:$16 sps:$4 sm:$0xff]  }
  0x30   :  { %v3159_v42 = vld [vmem:[#allocation2 + $0xc4] ss:$16 sps:$4 sm:$0xff]   ;;  %v3162_v43 = vld [vmem:[#allocation2 + $0xcc] ss:$16 sps:$4 sm:$0xff]   ;;  %v3157_v44 = vld [vmem:[#allocation2 + $0xc0] ss:$16 sps:$4 sm:$0xff]  }
  0x31   :  { %v3160_v45 = vld [vmem:[#allocation2 + $0xc8] ss:$16 sps:$4 sm:$0xff]   ;;  %v3165_v46 = vld [vmem:[#allocation2 + $0xe4] ss:$16 sps:$4 sm:$0xff]   ;;  %v3168_v47 = vld [vmem:[#allocation2 + $0xec] ss:$16 sps:$4 sm:$0xff]  }
  0x32   :  { %v3163_v48 = vld [vmem:[#allocation2 + $0xe0] ss:$16 sps:$4 sm:$0xff]   ;;  %v3166_v49 = vld [vmem:[#allocation2 + $0xe8] ss:$16 sps:$4 sm:$0xff]   ;;  %v3171_v50 = vld [vmem:[#allocation2 + $0x104] ss:$16 sps:$4 sm:$0xff]  }
  0x33   :  { %v3174_v51 = vld [vmem:[#allocation2 + $0x10c] ss:$16 sps:$4 sm:$0xff]   ;;  %v3169_v52 = vld [vmem:[#allocation2 + $0x100] ss:$16 sps:$4 sm:$0xff]   ;;  %v3172_v53 = vld [vmem:[#allocation2 + $0x108] ss:$16 sps:$4 sm:$0xff]  }
  0x34   :  { %v3177_v54 = vld [vmem:[#allocation2 + $0x124] ss:$16 sps:$4 sm:$0xff]   ;;  %v3180_v55 = vld [vmem:[#allocation2 + $0x12c] ss:$16 sps:$4 sm:$0xff]   ;;  %v3175_v56 = vld [vmem:[#allocation2 + $0x120] ss:$16 sps:$4 sm:$0xff]  }
  0x35   :  { %v3178_v57 = vld [vmem:[#allocation2 + $0x128] ss:$16 sps:$4 sm:$0xff]   ;;  %v3183_v58 = vld [vmem:[#allocation2 + $0x144] ss:$16 sps:$4 sm:$0xff]   ;;  %v3186_v59 = vld [vmem:[#allocation2 + $0x14c] ss:$16 sps:$4 sm:$0xff]  }
  0x36   :  { %v3181_v60 = vld [vmem:[#allocation2 + $0x140] ss:$16 sps:$4 sm:$0xff]   ;;  %v3184_v61 = vld [vmem:[#allocation2 + $0x148] ss:$16 sps:$4 sm:$0xff]   ;;  %v3189_v62 = vld [vmem:[#allocation2 + $0x164] ss:$16 sps:$4 sm:$0xff]  }
  0x37   :  { %v3192_v63 = vld [vmem:[#allocation2 + $0x16c] ss:$16 sps:$4 sm:$0xff]   ;;  %v3187_v0 = vld [vmem:[#allocation2 + $0x160] ss:$16 sps:$4 sm:$0xff]   ;;  %v3190_v1 = vld [vmem:[#allocation2 + $0x168] ss:$16 sps:$4 sm:$0xff]  }
  0x38   :  { %v3195_v2 = vld [vmem:[#allocation2 + $0x184] ss:$16 sps:$4 sm:$0xff]   ;;  %v3198_v3 = vld [vmem:[#allocation2 + $0x18c] ss:$16 sps:$4 sm:$0xff]   ;;  %v3193_v4 = vld [vmem:[#allocation2 + $0x180] ss:$16 sps:$4 sm:$0xff]  }
  0x39   :  { %v3196_v5 = vld [vmem:[#allocation2 + $0x188] ss:$16 sps:$4 sm:$0xff]   ;;  %v3201_v6 = vld [vmem:[#allocation2 + $0x1a4] ss:$16 sps:$4 sm:$0xff]   ;;  %v3204_v7 = vld [vmem:[#allocation2 + $0x1ac] ss:$16 sps:$4 sm:$0xff]  }
  0x3a   :  { %v3199_v8 = vld [vmem:[#allocation2 + $0x1a0] ss:$16 sps:$4 sm:$0xff]   ;;  %v3210_v12 = vld [vmem:[#allocation2 + $0x1cc] ss:$16 sps:$4 sm:$0xff]  }
  0x3b   :  { %v3205_v13 = vld [vmem:[#allocation2 + $0x1c0] ss:$16 sps:$4 sm:$0xff]  }
  0xa6   :  { %v50_v11 = vpop.permute.xlu0 %49 }
  0xa7   :  { %vm54_vm0 = vcmp.eq.s32.totalorder %v50_v11, %v47_v10  ;;  %v3207_v11 = vld [vmem:[#allocation2 + $0x1c4] ss:$16 sps:$4 sm:$0xff]  }
  0xa8   :  { %v2740_v20 = vsel %vm54_vm0, 1.0, %v3654_v19 }
  0xaa   :  { %v53_v14 = vpop.permute.xlu0 %52 }
  0xab   :  { %vm55_vm1 = vcmp.eq.s32.totalorder %v53_v14, %v47_v10  ;;  %v3202_v10 = vld [vmem:[#allocation2 + $0x1a8] ss:$16 sps:$4 sm:$0xff]  }
  0xac   :  { %v2741_v21 = vsel %vm55_vm1, 1.0, %v3654_v19  ;;  %v3208_v14 = vld [vmem:[#allocation2 + $0x1c8] ss:$16 sps:$4 sm:$0xff]   ;;  %v61_v19 = vld [vmem:[%s3769_s1] sm:$0xff] }
  0xad   :  { %v60_v22 = vpack.c.bf16 %v2741_v21, %v2740_v20  ;;  %v63_v20 = vld [vmem:[%s3769_s1 + $0x10] sm:$0xff] }
  0xae   :  { %v3219_v21 = vld [vmem:[#allocation2 + $0x204] ss:$16 sps:$4 sm:$0xff]  }
  0xaf   :  { %2746 = vmatmul.mubr.msk.bf16.vlgmr.msra.gmra.mrb[0].mxu0 %vm163_vm2, %v60_v22  ;;  %2747 = vmatmul.mubr.msk.bf16.vlgmr.msra.gmra.mrb[0].mxu1 %vm163_vm2, %v60_v22  ;;  %v3222_v22 = vld [vmem:[#allocation2 + $0x20c] ss:$16 sps:$4 sm:$0xff]  }
  0xb0   :  { %574 = vmatpush1.bf16.msra.mxu0 %v3121_v15  ;;  %617 = vmatpush1.bf16.msra.mxu1 %v3124_v16  ;;  %v3213_v15 = vld [vmem:[#allocation2 + $0x1e4] ss:$16 sps:$4 sm:$0xff]   ;;  %v3216_v16 = vld [vmem:[#allocation2 + $0x1ec] ss:$16 sps:$4 sm:$0xff]  }
  0xb1   :  { %575 = vmatprep.subr.bf16.mxu0 %v3129_v17  ;;  %618 = vmatprep.subr.bf16.mxu1 %v3132_v18  ;;  %v3211_v17 = vld [vmem:[#allocation2 + $0x1e0] ss:$16 sps:$4 sm:$0xff]   ;;  %v3214_v18 = vld [vmem:[#allocation2 + $0x1e8] ss:$16 sps:$4 sm:$0xff]  }
  0xb2   :  { %605 = vmatprep.mubr.bf16.mxu0 %v66_v25  ;;  %648 = vmatprep.mubr.bf16.mxu1 %v66_v25  ;;  %v3220_v25 = vld [vmem:[#allocation2 + $0x208] ss:$16 sps:$4 sm:$0xff]  }
  0xb4   :  { %576 = vmatpush1.bf16.msra.mxu0 %v3127_v23  ;;  %619 = vmatpush1.bf16.msra.mxu1 %v3130_v24  ;;  %v65_v23 = vpack.c.bf16 %v63_v20, %v61_v19  ;;  %v3217_v24 = vld [vmem:[#allocation2 + $0x200] ss:$16 sps:$4 sm:$0xff]   ;;  %v3309_v19 = vld [vmem:[#allocation2 + $0x3e4] ss:$16 sps:$4 sm:$0xff]   ;;  %v3312_v20 = vld [vmem:[#allocation2 + $0x3ec] ss:$16 sps:$4 sm:$0xff]  }
  0xb5   :  { %577 = vmatprep.subr.bf16.mxu0 %v3135_v26  ;;  %620 = vmatprep.subr.bf16.mxu1 %v3138_v27  ;;  %v3225_v26 = vld [vmem:[#allocation2 + $0x224] ss:$16 sps:$4 sm:$0xff]   ;;  %v3228_v27 = vld [vmem:[#allocation2 + $0x22c] ss:$16 sps:$4 sm:$0xff]  }
  0xb8   :  { %578 = vmatpush1.bf16.msra.mxu0 %v3133_v28  ;;  %621 = vmatpush1.bf16.msra.mxu1 %v3136_v29  ;;  %v3223_v28 = vld [vmem:[#allocation2 + $0x220] ss:$16 sps:$4 sm:$0xff]   ;;  %v3226_v29 = vld [vmem:[#allocation2 + $0x228] ss:$16 sps:$4 sm:$0xff]  }
  0xb9   :  { %579 = vmatprep.subr.bf16.mxu0 %v3141_v30  ;;  %622 = vmatprep.subr.bf16.mxu1 %v3144_v31  ;;  %v3231_v30 = vld [vmem:[#allocation2 + $0x244] ss:$16 sps:$4 sm:$0xff]   ;;  %v3234_v31 = vld [vmem:[#allocation2 + $0x24c] ss:$16 sps:$4 sm:$0xff]  }
  0xbc   :  { %580 = vmatpush1.bf16.msra.mxu0 %v3139_v32  ;;  %623 = vmatpush1.bf16.msra.mxu1 %v3142_v33  ;;  %v3229_v32 = vld [vmem:[#allocation2 + $0x240] ss:$16 sps:$4 sm:$0xff]   ;;  %v3232_v33 = vld [vmem:[#allocation2 + $0x248] ss:$16 sps:$4 sm:$0xff]  }
  0xbd   :  { %581 = vmatprep.subr.bf16.mxu0 %v3147_v34  ;;  %624 = vmatprep.subr.bf16.mxu1 %v3150_v35  ;;  %v3237_v34 = vld [vmem:[#allocation2 + $0x264] ss:$16 sps:$4 sm:$0xff]   ;;  %v3240_v35 = vld [vmem:[#allocation2 + $0x26c] ss:$16 sps:$4 sm:$0xff]  }
  0xc0   :  { %582 = vmatpush1.bf16.msra.mxu0 %v3145_v36  ;;  %625 = vmatpush1.bf16.msra.mxu1 %v3148_v37  ;;  %v3235_v36 = vld [vmem:[#allocation2 + $0x260] ss:$16 sps:$4 sm:$0xff]   ;;  %v3238_v37 = vld [vmem:[#allocation2 + $0x268] ss:$16 sps:$4 sm:$0xff]  }
  0xc1   :  { %583 = vmatprep.subr.bf16.mxu0 %v3153_v38  ;;  %626 = vmatprep.subr.bf16.mxu1 %v3156_v39  ;;  %v3243_v38 = vld [vmem:[#allocation2 + $0x284] ss:$16 sps:$4 sm:$0xff]   ;;  %v3246_v39 = vld [vmem:[#allocation2 + $0x28c] ss:$16 sps:$4 sm:$0xff]  }
  0xc4   :  { %584 = vmatpush1.bf16.msra.mxu0 %v3151_v40  ;;  %627 = vmatpush1.bf16.msra.mxu1 %v3154_v41  ;;  %v3241_v40 = vld [vmem:[#allocation2 + $0x280] ss:$16 sps:$4 sm:$0xff]   ;;  %v3244_v41 = vld [vmem:[#allocation2 + $0x288] ss:$16 sps:$4 sm:$0xff]  }
  0xc5   :  { %585 = vmatprep.subr.bf16.mxu0 %v3159_v42  ;;  %628 = vmatprep.subr.bf16.mxu1 %v3162_v43  ;;  %v3249_v42 = vld [vmem:[#allocation2 + $0x2a4] ss:$16 sps:$4 sm:$0xff]   ;;  %v3252_v43 = vld [vmem:[#allocation2 + $0x2ac] ss:$16 sps:$4 sm:$0xff]  }
  0xc8   :  { %586 = vmatpush1.bf16.msra.mxu0 %v3157_v44  ;;  %629 = vmatpush1.bf16.msra.mxu1 %v3160_v45  ;;  %v3247_v44 = vld [vmem:[#allocation2 + $0x2a0] ss:$16 sps:$4 sm:$0xff]   ;;  %v3250_v45 = vld [vmem:[#allocation2 + $0x2a8] ss:$16 sps:$4 sm:$0xff]  }
  0xc9   :  { %587 = vmatprep.subr.bf16.mxu0 %v3165_v46  ;;  %630 = vmatprep.subr.bf16.mxu1 %v3168_v47  ;;  %v3255_v46 = vld [vmem:[#allocation2 + $0x2c4] ss:$16 sps:$4 sm:$0xff]   ;;  %v3258_v47 = vld [vmem:[#allocation2 + $0x2cc] ss:$16 sps:$4 sm:$0xff]  }
  0xcc   :  { %588 = vmatpush1.bf16.msra.mxu0 %v3163_v48  ;;  %631 = vmatpush1.bf16.msra.mxu1 %v3166_v49  ;;  %v3253_v48 = vld [vmem:[#allocation2 + $0x2c0] ss:$16 sps:$4 sm:$0xff]   ;;  %v3256_v49 = vld [vmem:[#allocation2 + $0x2c8] ss:$16 sps:$4 sm:$0xff]  }
  0xcd   :  { %589 = vmatprep.subr.bf16.mxu0 %v3171_v50  ;;  %632 = vmatprep.subr.bf16.mxu1 %v3174_v51  ;;  %v3261_v50 = vld [vmem:[#allocation2 + $0x2e4] ss:$16 sps:$4 sm:$0xff]   ;;  %v3264_v51 = vld [vmem:[#allocation2 + $0x2ec] ss:$16 sps:$4 sm:$0xff]  }
  0xd0   :  { %590 = vmatpush1.bf16.msra.mxu0 %v3169_v52  ;;  %633 = vmatpush1.bf16.msra.mxu1 %v3172_v53  ;;  %v3259_v52 = vld [vmem:[#allocation2 + $0x2e0] ss:$16 sps:$4 sm:$0xff]   ;;  %v3262_v53 = vld [vmem:[#allocation2 + $0x2e8] ss:$16 sps:$4 sm:$0xff]  }
  0xd1   :  { %591 = vmatprep.subr.bf16.mxu0 %v3177_v54  ;;  %634 = vmatprep.subr.bf16.mxu1 %v3180_v55  ;;  %v3267_v54 = vld [vmem:[#allocation2 + $0x304] ss:$16 sps:$4 sm:$0xff]   ;;  %v3270_v55 = vld [vmem:[#allocation2 + $0x30c] ss:$16 sps:$4 sm:$0xff]  }
  0xd4   :  { %592 = vmatpush1.bf16.msra.mxu0 %v3175_v56  ;;  %635 = vmatpush1.bf16.msra.mxu1 %v3178_v57  ;;  %v3265_v56 = vld [vmem:[#allocation2 + $0x300] ss:$16 sps:$4 sm:$0xff]   ;;  %v3268_v57 = vld [vmem:[#allocation2 + $0x308] ss:$16 sps:$4 sm:$0xff]  }
  0xd5   :  { %593 = vmatprep.subr.bf16.mxu0 %v3183_v58  ;;  %636 = vmatprep.subr.bf16.mxu1 %v3186_v59  ;;  %v3273_v58 = vld [vmem:[#allocation2 + $0x324] ss:$16 sps:$4 sm:$0xff]   ;;  %v3276_v59 = vld [vmem:[#allocation2 + $0x32c] ss:$16 sps:$4 sm:$0xff]  }
  0xd8   :  { %594 = vmatpush1.bf16.msra.mxu0 %v3181_v60  ;;  %637 = vmatpush1.bf16.msra.mxu1 %v3184_v61  ;;  %v3271_v60 = vld [vmem:[#allocation2 + $0x320] ss:$16 sps:$4 sm:$0xff]   ;;  %v3274_v61 = vld [vmem:[#allocation2 + $0x328] ss:$16 sps:$4 sm:$0xff]  }
  0xd9   :  { %595 = vmatprep.subr.bf16.mxu0 %v3189_v62  ;;  %638 = vmatprep.subr.bf16.mxu1 %v3192_v63  ;;  %v3279_v62 = vld [vmem:[#allocation2 + $0x344] ss:$16 sps:$4 sm:$0xff]   ;;  %v3282_v63 = vld [vmem:[#allocation2 + $0x34c] ss:$16 sps:$4 sm:$0xff]  }
  0xdc   :  { %596 = vmatpush1.bf16.msra.mxu0 %v3187_v0  ;;  %639 = vmatpush1.bf16.msra.mxu1 %v3190_v1  ;;  %v3277_v0 = vld [vmem:[#allocation2 + $0x340] ss:$16 sps:$4 sm:$0xff]   ;;  %v3280_v1 = vld [vmem:[#allocation2 + $0x348] ss:$16 sps:$4 sm:$0xff]  }
  0xdd   :  { %597 = vmatprep.subr.bf16.mxu0 %v3195_v2  ;;  %640 = vmatprep.subr.bf16.mxu1 %v3198_v3  ;;  %v3285_v2 = vld [vmem:[#allocation2 + $0x364] ss:$16 sps:$4 sm:$0xff]   ;;  %v3288_v3 = vld [vmem:[#allocation2 + $0x36c] ss:$16 sps:$4 sm:$0xff]  }
  0xe0   :  { %598 = vmatpush1.bf16.msra.mxu0 %v3193_v4  ;;  %641 = vmatpush1.bf16.msra.mxu1 %v3196_v5  ;;  %v3283_v4 = vld [vmem:[#allocation2 + $0x360] ss:$16 sps:$4 sm:$0xff]   ;;  %v3286_v5 = vld [vmem:[#allocation2 + $0x368] ss:$16 sps:$4 sm:$0xff]  }
  0xe1   :  { %599 = vmatprep.subr.bf16.mxu0 %v3201_v6  ;;  %642 = vmatprep.subr.bf16.mxu1 %v3204_v7  ;;  %v3291_v6 = vld [vmem:[#allocation2 + $0x384] ss:$16 sps:$4 sm:$0xff]   ;;  %v3294_v7 = vld [vmem:[#allocation2 + $0x38c] ss:$16 sps:$4 sm:$0xff]  }
  0xe4   :  { %600 = vmatpush1.bf16.msra.mxu0 %v3199_v8  ;;  %643 = vmatpush1.bf16.msra.mxu1 %v3202_v10  ;;  %v3289_v8 = vld [vmem:[#allocation2 + $0x380] ss:$16 sps:$4 sm:$0xff]   ;;  %v3292_v10 = vld [vmem:[#allocation2 + $0x388] ss:$16 sps:$4 sm:$0xff]  }
  0xe5   :  { %601 = vmatprep.subr.bf16.mxu0 %v3207_v11  ;;  %644 = vmatprep.subr.bf16.mxu1 %v3210_v12  ;;  %v3297_v11 = vld [vmem:[#allocation2 + $0x3a4] ss:$16 sps:$4 sm:$0xff]   ;;  %v3300_v12 = vld [vmem:[#allocation2 + $0x3ac] ss:$16 sps:$4 sm:$0xff]  }
  0xe8   :  { %602 = vmatpush1.bf16.msra.mxu0 %v3205_v13  ;;  %645 = vmatpush1.bf16.msra.mxu1 %v3208_v14  ;;  %v3295_v13 = vld [vmem:[#allocation2 + $0x3a0] ss:$16 sps:$4 sm:$0xff]   ;;  %v3298_v14 = vld [vmem:[#allocation2 + $0x3a8] ss:$16 sps:$4 sm:$0xff]  }
  0xe9   :  { %603 = vmatprep.subr.bf16.mxu0 %v3213_v15  ;;  %646 = vmatprep.subr.bf16.mxu1 %v3216_v16  ;;  %v3303_v15 = vld [vmem:[#allocation2 + $0x3c4] ss:$16 sps:$4 sm:$0xff]   ;;  %v3306_v16 = vld [vmem:[#allocation2 + $0x3cc] ss:$16 sps:$4 sm:$0xff]  }
  0xec   :  { %604 = vmatpush1.bf16.msra.mxu0 %v3211_v17  ;;  %647 = vmatpush1.bf16.msra.mxu1 %v3214_v18  ;;  %v3301_v17 = vld [vmem:[#allocation2 + $0x3c0] ss:$16 sps:$4 sm:$0xff]   ;;  %v3304_v18 = vld [vmem:[#allocation2 + $0x3c8] ss:$16 sps:$4 sm:$0xff]  }
  0xed   :  { %1505 = vmatprep.subr.bf16.mxu0 %v3219_v21  ;;  %1591 = vmatprep.subr.bf16.mxu1 %v3222_v22  ;;  %v3307_v21 = vld [vmem:[#allocation2 + $0x3e0] ss:$16 sps:$4 sm:$0xff]   ;;  %v3310_v22 = vld [vmem:[#allocation2 + $0x3e8] ss:$16 sps:$4 sm:$0xff]  }
  0xef   :  { %606 = vmatmul.mubr.bf16.vlgmr.msra.gmra.mrb[0].mxu0 %v65_v23  ;;  %649 = vmatmul.mubr.bf16.vlgmr.msra.gmra.mrb[0].mxu1 %v65_v23  ;;  %v3315_v23 = vld [vmem:[#allocation2 + $0x404] ss:$16 sps:$4 sm:$0xff]  }
  0xf0   :  { %1506 = vmatpush1.bf16.msra.mxu0 %v3217_v24  ;;  %1592 = vmatpush1.bf16.msra.mxu1 %v3220_v25  ;;  %v3318_v24 = vld [vmem:[#allocation2 + $0x40c] ss:$16 sps:$4 sm:$0xff]   ;;  %v661_v25 = vshrl.u32 %v46_v9, 7 }
  0xf1   :  { %1507 = vmatprep.subr.bf16.mxu0 %v3225_v26  ;;  %1593 = vmatprep.subr.bf16.mxu1 %v3228_v27 }
  0xf2   :  { %v3724_v26 = vsub.s32 0, %v661_v25  ;;  %v3726_v27 = vsub.s32 2, %v661_v25 }
  0xf4   :  { %1508 = vmatpush1.bf16.msra.mxu0 %v3223_v28  ;;  %1594 = vmatpush1.bf16.msra.mxu1 %v3226_v29  ;;  %v67_v28 = vld [vmem:[#allocation4] ss:$8 sm:$0xf]  ;;  %v3728_v29 = vsub.s32 1, %v661_v25 }
  0xf5   :  { %1509 = vmatprep.subr.bf16.mxu0 %v3231_v30  ;;  %1595 = vmatprep.subr.bf16.mxu1 %v3234_v31  ;;  %v3730_v30 = vsub.s32 3, %v661_v25  ;;  %v663_v31 = vrot.slane %v67_v28, %v3724_v26  ;;  %v3345_v25 = vld [vmem:[#allocation2 + $0x4a4] ss:$16 sps:$4 sm:$0xff]  }
  0xf8   :  { %1510 = vmatpush1.bf16.msra.mxu0 %v3229_v32  ;;  %1596 = vmatpush1.bf16.msra.mxu1 %v3232_v33  ;;  %v671_v32 = vrot.slane %v67_v28, %v3726_v27  ;;  %v667_v33 = vrot.slane %v67_v28, %v3728_v29 }
  0xf9   :  { %1511 = vmatprep.subr.bf16.mxu0 %v3237_v34  ;;  %1597 = vmatprep.subr.bf16.mxu1 %v3240_v35  ;;  %v675_v34 = vrot.slane %v67_v28, %v3730_v30  ;;  %v3348_v28 = vld [vmem:[#allocation2 + $0x4ac] ss:$16 sps:$4 sm:$0xff]  }
  0xfc   :  { %1512 = vmatpush1.bf16.msra.mxu0 %v3235_v36  ;;  %1598 = vmatpush1.bf16.msra.mxu1 %v3238_v37 }
  0xfd   :  { %1513 = vmatprep.subr.bf16.mxu0 %v3243_v38  ;;  %1599 = vmatprep.subr.bf16.mxu1 %v3246_v39 }
 0x100   :  { %1514 = vmatpush1.bf16.msra.mxu0 %v3241_v40  ;;  %1600 = vmatpush1.bf16.msra.mxu1 %v3244_v41 }
 0x101   :  { %1515 = vmatprep.subr.bf16.mxu0 %v3249_v42  ;;  %1601 = vmatprep.subr.bf16.mxu1 %v3252_v43 }
 0x104   :  { %1516 = vmatpush1.bf16.msra.mxu0 %v3247_v44  ;;  %1602 = vmatpush1.bf16.msra.mxu1 %v3250_v45 }
 0x105   :  { %1517 = vmatprep.subr.bf16.mxu0 %v3255_v46  ;;  %1603 = vmatprep.subr.bf16.mxu1 %v3258_v47 }
 0x108   :  { %1518 = vmatpush1.bf16.msra.mxu0 %v3253_v48  ;;  %1604 = vmatpush1.bf16.msra.mxu1 %v3256_v49 }
 0x109   :  { %1519 = vmatprep.subr.bf16.mxu0 %v3261_v50  ;;  %1605 = vmatprep.subr.bf16.mxu1 %v3264_v51 }
 0x10c   :  { %1520 = vmatpush1.bf16.msra.mxu0 %v3259_v52  ;;  %1606 = vmatpush1.bf16.msra.mxu1 %v3262_v53 }
 0x10d   :  { %1521 = vmatprep.subr.bf16.mxu0 %v3267_v54  ;;  %1607 = vmatprep.subr.bf16.mxu1 %v3270_v55 }
 0x110   :  { %1522 = vmatpush1.bf16.msra.mxu0 %v3265_v56  ;;  %1608 = vmatpush1.bf16.msra.mxu1 %v3268_v57 }
 0x111   :  { %1523 = vmatprep.subr.bf16.mxu0 %v3273_v58  ;;  %1609 = vmatprep.subr.bf16.mxu1 %v3276_v59 }
 0x114   :  { %1524 = vmatpush1.bf16.msra.mxu0 %v3271_v60  ;;  %1610 = vmatpush1.bf16.msra.mxu1 %v3274_v61 }
 0x115   :  { %1525 = vmatprep.subr.bf16.mxu0 %v3279_v62  ;;  %1611 = vmatprep.subr.bf16.mxu1 %v3282_v63 }
 0x118   :  { %1526 = vmatpush1.bf16.msra.mxu0 %v3277_v0  ;;  %1612 = vmatpush1.bf16.msra.mxu1 %v3280_v1 }
 0x119   :  { %1527 = vmatprep.subr.bf16.mxu0 %v3285_v2  ;;  %1613 = vmatprep.subr.bf16.mxu1 %v3288_v3 }
 0x11c   :  { %1528 = vmatpush1.bf16.msra.mxu0 %v3283_v4  ;;  %1614 = vmatpush1.bf16.msra.mxu1 %v3286_v5  ;;  %v3313_v5 = vld [vmem:[#allocation2 + $0x400] ss:$16 sps:$4 sm:$0xff]  }
 0x11d   :  { %1529 = vmatprep.subr.bf16.mxu0 %v3291_v6  ;;  %1615 = vmatprep.subr.bf16.mxu1 %v3294_v7  ;;  %v3316_v6 = vld [vmem:[#allocation2 + $0x408] ss:$16 sps:$4 sm:$0xff]  }
 0x120   :  { %1530 = vmatpush1.bf16.msra.mxu0 %v3289_v8  ;;  %1616 = vmatpush1.bf16.msra.mxu1 %v3292_v10  ;;  %v3321_v8 = vld [vmem:[#allocation2 + $0x424] ss:$16 sps:$4 sm:$0xff]   ;;  %v3324_v10 = vld [vmem:[#allocation2 + $0x42c] ss:$16 sps:$4 sm:$0xff]  }
 0x121   :  { %1531 = vmatprep.subr.bf16.mxu0 %v3297_v11  ;;  %1617 = vmatprep.subr.bf16.mxu1 %v3300_v12  ;;  %v3319_v11 = vld [vmem:[#allocation2 + $0x420] ss:$16 sps:$4 sm:$0xff]   ;;  %v3322_v12 = vld [vmem:[#allocation2 + $0x428] ss:$16 sps:$4 sm:$0xff]  }
 0x124   :  { %1532 = vmatpush1.bf16.msra.mxu0 %v3295_v13  ;;  %1618 = vmatpush1.bf16.msra.mxu1 %v3298_v14  ;;  %v3327_v13 = vld [vmem:[#allocation2 + $0x444] ss:$16 sps:$4 sm:$0xff]   ;;  %v3330_v14 = vld [vmem:[#allocation2 + $0x44c] ss:$16 sps:$4 sm:$0xff]  }
 0x125   :  { %1533 = vmatprep.subr.bf16.mxu0 %v3303_v15  ;;  %1619 = vmatprep.subr.bf16.mxu1 %v3306_v16  ;;  %v3325_v15 = vld [vmem:[#allocation2 + $0x440] ss:$16 sps:$4 sm:$0xff]   ;;  %v3328_v16 = vld [vmem:[#allocation2 + $0x448] ss:$16 sps:$4 sm:$0xff]  }
 0x128   :  { %1534 = vmatpush1.bf16.msra.mxu0 %v3301_v17  ;;  %1620 = vmatpush1.bf16.msra.mxu1 %v3304_v18  ;;  %v3333_v17 = vld [vmem:[#allocation2 + $0x464] ss:$16 sps:$4 sm:$0xff]   ;;  %v3336_v18 = vld [vmem:[#allocation2 + $0x46c] ss:$16 sps:$4 sm:$0xff]  }
 0x129   :  { %1535 = vmatprep.subr.bf16.mxu0 %v3309_v19  ;;  %1621 = vmatprep.subr.bf16.mxu1 %v3312_v20  ;;  %v3331_v19 = vld [vmem:[#allocation2 + $0x460] ss:$16 sps:$4 sm:$0xff]   ;;  %v3334_v20 = vld [vmem:[#allocation2 + $0x468] ss:$16 sps:$4 sm:$0xff]  }
 0x12c   :  { %1536 = vmatpush1.bf16.msra.mxu0 %v3307_v21  ;;  %1622 = vmatpush1.bf16.msra.mxu1 %v3310_v22  ;;  %v3339_v21 = vld [vmem:[#allocation2 + $0x484] ss:$16 sps:$4 sm:$0xff]   ;;  %v3342_v22 = vld [vmem:[#allocation2 + $0x48c] ss:$16 sps:$4 sm:$0xff]  }
 0x12d   :  { %1548 = vmatprep.subr.bf16.mxu0 %v3315_v23  ;;  %1634 = vmatprep.subr.bf16.mxu1 %v3318_v24  ;;  %v3337_v23 = vld [vmem:[#allocation2 + $0x480] ss:$16 sps:$4 sm:$0xff]   ;;  %v3340_v24 = vld [vmem:[#allocation2 + $0x488] ss:$16 sps:$4 sm:$0xff]  }
 0x1c2   :  { %v607_v35 = vpop.f32.mrb[0].mxu0  ;;  %v650_v36 = vpop.f32.mrb[0].mxu1 }
 0x1c3   :  { %v680_v9 = vadd.f32 %v663_v31, %v607_v35  ;;  %v682_v37 = vadd.f32 %v671_v32, %v650_v36  ;;  %v609_v38 = vpop.f32.mrb[1].mxu0  ;;  %v652_v39 = vpop.f32.mrb[1].mxu1  ;;  %v3349_v35 = vld [vmem:[#allocation2 + $0x4c0] ss:$16 sps:$4 sm:$0xff]   ;;  %v3352_v36 = vld [vmem:[#allocation2 + $0x4c8] ss:$16 sps:$4 sm:$0xff]  }
 0x1c4   :  { %v681_v40 = vadd.f32 %v667_v33, %v609_v38  ;;  %v683_v41 = vadd.f32 %v675_v34, %v652_v39  ;;  %v611_v42 = vpop.f32.mrb[2].mxu0  ;;  %v654_v43 = vpop.f32.mrb[2].mxu1  ;;  %v3355_v38 = vld [vmem:[#allocation2 + $0x4e0] ss:$16 sps:$4 sm:$0xff]   ;;  %v3358_v39 = vld [vmem:[#allocation2 + $0x4e8] ss:$16 sps:$4 sm:$0xff]  }
 0x1c5   :  { %vm688_vm3 = vcmp.gt.f32.partialorder %v680_v9, 0.0  ;;  %v696_v44 = vmul.f32 0.2, %v680_v9  ;;  %vm690_vm4 = vcmp.gt.f32.partialorder %v682_v37, 0.0  ;;  %v698_v45 = vmul.f32 0.2, %v682_v37 }
 0x1c6   :  { %vm689_vm5 = vcmp.gt.f32.partialorder %v681_v40, 0.0  ;;  %v697_v46 = vmul.f32 0.2, %v681_v40  ;;  %vm691_vm6 = vcmp.gt.f32.partialorder %v683_v41, 0.0  ;;  %v699_v47 = vmul.f32 0.2, %v683_v41 }
 0x1c7   :  { %v684_v48 = vadd.f32 %v663_v31, %v611_v42  ;;  %v686_v49 = vadd.f32 %v671_v32, %v654_v43  ;;  %v613_v50 = vpop.f32.mrb[3].mxu0  ;;  %v656_v51 = vpop.f32.mrb[3].mxu1  ;;  %v704_v52 = vsel %vm688_vm3, %v680_v9, %v696_v44  ;;  %v706_v53 = vsel %vm690_vm4, %v682_v37, %v698_v45  ;;  %v3343_v31 = vld [vmem:[#allocation2 + $0x4a0] ss:$16 sps:$4 sm:$0xff]   ;;  %v3346_v32 = vld [vmem:[#allocation2 + $0x4a8] ss:$16 sps:$4 sm:$0xff]  }
 0x1c8   :  { %v685_v54 = vadd.f32 %v667_v33, %v613_v50  ;;  %v687_v55 = vadd.f32 %v675_v34, %v656_v51  ;;  %v705_v62 = vsel %vm689_vm5, %v681_v40, %v697_v46  ;;  %v707_v63 = vsel %vm691_vm6, %v683_v41, %v699_v47  ;;  %v3351_v33 = vld [vmem:[#allocation2 + $0x4c4] ss:$16 sps:$4 sm:$0xff]   ;;  %v3354_v34 = vld [vmem:[#allocation2 + $0x4cc] ss:$16 sps:$4 sm:$0xff]   ;;  %v3361_v42 = vld [vmem:[#allocation2 + $0x500] ss:$16 sps:$4 sm:$0xff]  }
 0x1c9   :  { %vm692_vm7 = vcmp.gt.f32.partialorder %v684_v48, 0.0  ;;  %v700_v56 = vmul.f32 0.2, %v684_v48  ;;  %vm694_vm8 = vcmp.gt.f32.partialorder %v686_v49, 0.0  ;;  %v702_v57 = vmul.f32 0.2, %v686_v49 }
 0x1ca   :  { %vm693_vm9 = vcmp.gt.f32.partialorder %v685_v54, 0.0  ;;  %v701_v58 = vmul.f32 0.2, %v685_v54  ;;  %vm695_vm10 = vcmp.gt.f32.partialorder %v687_v55, 0.0  ;;  %v703_v59 = vmul.f32 0.2, %v687_v55 }
 0x1cb   :  { %v708_v60 = vsel %vm692_vm7, %v684_v48, %v700_v56  ;;  %v710_v61 = vsel %vm694_vm8, %v686_v49, %v702_v57  ;;  %v3357_v9 = vld [vmem:[#allocation2 + $0x4e4] ss:$16 sps:$4 sm:$0xff]   ;;  %v3360_v37 = vld [vmem:[#allocation2 + $0x4ec] ss:$16 sps:$4 sm:$0xff]   ;;  %v3364_v43 = vld [vmem:[#allocation2 + $0x508] ss:$16 sps:$4 sm:$0xff]  }
 0x1cc   :  { %v712_v0 = vpack.c.bf16 %v708_v60, %v704_v52  ;;  %v3738_v1 = vpack.c.bf16 %v710_v61, %v706_v53  ;;  %v709_v2 = vsel %vm693_vm9, %v685_v54, %v701_v58  ;;  %v711_v3 = vsel %vm695_vm10, %v687_v55, %v703_v59  ;;  %v3363_v40 = vld [vmem:[#allocation2 + $0x504] ss:$16 sps:$4 sm:$0xff]   ;;  %v3366_v41 = vld [vmem:[#allocation2 + $0x50c] ss:$16 sps:$4 sm:$0xff]   ;;  %v3367_v46 = vld [vmem:[#allocation2 + $0x520] ss:$16 sps:$4 sm:$0xff]  }
 0x1cd   :  { %v713_v4 = vpack.c.bf16 %v709_v2, %v705_v62  ;;  %v715_v7 = vpack.c.bf16 %v711_v3, %v707_v63  ;;  %v3369_v44 = vld [vmem:[#allocation2 + $0x524] ss:$16 sps:$4 sm:$0xff]   ;;  %v3372_v45 = vld [vmem:[#allocation2 + $0x52c] ss:$16 sps:$4 sm:$0xff]   ;;  %v3370_v47 = vld [vmem:[#allocation2 + $0x528] ss:$16 sps:$4 sm:$0xff]  }
 0x1ce   :  { %v3375_v48 = vld [vmem:[#allocation2 + $0x544] ss:$16 sps:$4 sm:$0xff]   ;;  %v3378_v49 = vld [vmem:[#allocation2 + $0x54c] ss:$16 sps:$4 sm:$0xff]   ;;  %v3373_v50 = vld [vmem:[#allocation2 + $0x540] ss:$16 sps:$4 sm:$0xff]  }
 0x1cf   :  { %1537 = vmatprep.mubr.bf16.mxu0 %v713_v4  ;;  %1623 = vmatprep.mubr.bf16.mxu1 %v713_v4  ;;  %v3376_v51 = vld [vmem:[#allocation2 + $0x548] ss:$16 sps:$4 sm:$0xff]   ;;  %v3381_v52 = vld [vmem:[#allocation2 + $0x564] ss:$16 sps:$4 sm:$0xff]   ;;  %v3384_v53 = vld [vmem:[#allocation2 + $0x56c] ss:$16 sps:$4 sm:$0xff]  }
 0x1d0   :  { %1538 = vmatmul.mubr.bf16.vlgmr.msra.gmra.mrb[4].mxu0 %v712_v0  ;;  %1624 = vmatmul.mubr.bf16.vlgmr.msra.gmra.mrb[4].mxu1 %v712_v0  ;;  %v3379_v54 = vld [vmem:[#allocation2 + $0x560] ss:$16 sps:$4 sm:$0xff]   ;;  %v3382_v55 = vld [vmem:[#allocation2 + $0x568] ss:$16 sps:$4 sm:$0xff]   ;;  %v3387_v56 = vld [vmem:[#allocation2 + $0x584] ss:$16 sps:$4 sm:$0xff]  }
 0x1d1   :  { %1549 = vmatpush1.bf16.msra.mxu0 %v3313_v5  ;;  %1635 = vmatpush1.bf16.msra.mxu1 %v3316_v6  ;;  %v3390_v57 = vld [vmem:[#allocation2 + $0x58c] ss:$16 sps:$4 sm:$0xff]   ;;  %v3385_v58 = vld [vmem:[#allocation2 + $0x580] ss:$16 sps:$4 sm:$0xff]   ;;  %v3388_v59 = vld [vmem:[#allocation2 + $0x588] ss:$16 sps:$4 sm:$0xff]  }
 0x1d2   :  { %1580 = vmatprep.mubr.bf16.mxu0 %v715_v7  ;;  %1666 = vmatprep.mubr.bf16.mxu1 %v715_v7  ;;  %v3393_v60 = vld [vmem:[#allocation2 + $0x5a4] ss:$16 sps:$4 sm:$0xff]   ;;  %v3396_v61 = vld [vmem:[#allocation2 + $0x5ac] ss:$16 sps:$4 sm:$0xff]   ;;  %v3391_v62 = vld [vmem:[#allocation2 + $0x5a0] ss:$16 sps:$4 sm:$0xff]  }
 0x1d3   :  { %1550 = vmatprep.subr.bf16.mxu0 %v3321_v8  ;;  %1636 = vmatprep.subr.bf16.mxu1 %v3324_v10  ;;  %v3394_v63 = vld [vmem:[#allocation2 + $0x5a8] ss:$16 sps:$4 sm:$0xff]   ;;  %v3399_v0 = vld [vmem:[#allocation2 + $0x5c4] ss:$16 sps:$4 sm:$0xff]   ;;  %v3402_v2 = vld [vmem:[#allocation2 + $0x5cc] ss:$16 sps:$4 sm:$0xff]  }
 0x1d4   :  { %v3397_v3 = vld [vmem:[#allocation2 + $0x5c0] ss:$16 sps:$4 sm:$0xff]   ;;  %v3400_v4 = vld [vmem:[#allocation2 + $0x5c8] ss:$16 sps:$4 sm:$0xff]   ;;  %v3405_v5 = vld [vmem:[#allocation2 + $0x5e4] ss:$16 sps:$4 sm:$0xff]  }
 0x1d5   :  { %1551 = vmatpush1.bf16.msra.mxu0 %v3319_v11  ;;  %1637 = vmatpush1.bf16.msra.mxu1 %v3322_v12  ;;  %v3408_v6 = vld [vmem:[#allocation2 + $0x5ec] ss:$16 sps:$4 sm:$0xff]   ;;  %v3403_v7 = vld [vmem:[#allocation2 + $0x5e0] ss:$16 sps:$4 sm:$0xff]   ;;  %v3406_v8 = vld [vmem:[#allocation2 + $0x5e8] ss:$16 sps:$4 sm:$0xff]  }
 0x1d6   :  { %1552 = vmatprep.subr.bf16.mxu0 %v3327_v13  ;;  %1638 = vmatprep.subr.bf16.mxu1 %v3330_v14  ;;  %v3411_v10 = vld [vmem:[#allocation2 + $0x604] ss:$16 sps:$4 sm:$0xff]   ;;  %v3414_v11 = vld [vmem:[#allocation2 + $0x60c] ss:$16 sps:$4 sm:$0xff]   ;;  %v3409_v12 = vld [vmem:[#allocation2 + $0x600] ss:$16 sps:$4 sm:$0xff]  }
 0x1d7   :  { %v3412_v13 = vld [vmem:[#allocation2 + $0x608] ss:$16 sps:$4 sm:$0xff]   ;;  %v3417_v14 = vld [vmem:[#allocation2 + $0x624] ss:$16 sps:$4 sm:$0xff]  }
 0x1d9   :  { %1553 = vmatpush1.bf16.msra.mxu0 %v3325_v15  ;;  %1639 = vmatpush1.bf16.msra.mxu1 %v3328_v16  ;;  %v3420_v15 = vld [vmem:[#allocation2 + $0x62c] ss:$16 sps:$4 sm:$0xff]   ;;  %v3415_v16 = vld [vmem:[#allocation2 + $0x620] ss:$16 sps:$4 sm:$0xff]  }
 0x1da   :  { %1554 = vmatprep.subr.bf16.mxu0 %v3333_v17  ;;  %1640 = vmatprep.subr.bf16.mxu1 %v3336_v18  ;;  %v3418_v17 = vld [vmem:[#allocation2 + $0x628] ss:$16 sps:$4 sm:$0xff]   ;;  %v3423_v18 = vld [vmem:[#allocation2 + $0x644] ss:$16 sps:$4 sm:$0xff]  }
 0x1dd   :  { %1555 = vmatpush1.bf16.msra.mxu0 %v3331_v19  ;;  %1641 = vmatpush1.bf16.msra.mxu1 %v3334_v20  ;;  %v3426_v19 = vld [vmem:[#allocation2 + $0x64c] ss:$16 sps:$4 sm:$0xff]   ;;  %v3421_v20 = vld [vmem:[#allocation2 + $0x640] ss:$16 sps:$4 sm:$0xff]  }
 0x1de   :  { %1556 = vmatprep.subr.bf16.mxu0 %v3339_v21  ;;  %1642 = vmatprep.subr.bf16.mxu1 %v3342_v22  ;;  %v3424_v21 = vld [vmem:[#allocation2 + $0x648] ss:$16 sps:$4 sm:$0xff]   ;;  %v3429_v22 = vld [vmem:[#allocation2 + $0x664] ss:$16 sps:$4 sm:$0xff]  }
 0x1e1   :  { %1557 = vmatpush1.bf16.msra.mxu0 %v3337_v23  ;;  %1643 = vmatpush1.bf16.msra.mxu1 %v3340_v24  ;;  %v3432_v23 = vld [vmem:[#allocation2 + $0x66c] ss:$16 sps:$4 sm:$0xff]   ;;  %v3427_v24 = vld [vmem:[#allocation2 + $0x660] ss:$16 sps:$4 sm:$0xff]  }
 0x1e2   :  { %1558 = vmatprep.subr.bf16.mxu0 %v3345_v25  ;;  %1644 = vmatprep.subr.bf16.mxu1 %v3348_v28  ;;  %v3435_v25 = vld [vmem:[#allocation2 + $0x684] ss:$16 sps:$4 sm:$0xff]   ;;  %v3438_v28 = vld [vmem:[#allocation2 + $0x68c] ss:$16 sps:$4 sm:$0xff]  }
 0x1e5   :  { %1559 = vmatpush1.bf16.msra.mxu0 %v3343_v31  ;;  %1645 = vmatpush1.bf16.msra.mxu1 %v3346_v32  ;;  %v3433_v31 = vld [vmem:[#allocation2 + $0x680] ss:$16 sps:$4 sm:$0xff]   ;;  %v3436_v32 = vld [vmem:[#allocation2 + $0x688] ss:$16 sps:$4 sm:$0xff]  }
 0x1e6   :  { %1560 = vmatprep.subr.bf16.mxu0 %v3351_v33  ;;  %1646 = vmatprep.subr.bf16.mxu1 %v3354_v34  ;;  %v3441_v33 = vld [vmem:[#allocation2 + $0x6a4] ss:$16 sps:$4 sm:$0xff]   ;;  %v3444_v34 = vld [vmem:[#allocation2 + $0x6ac] ss:$16 sps:$4 sm:$0xff]  }
 0x1e9   :  { %1561 = vmatpush1.bf16.msra.mxu0 %v3349_v35  ;;  %1647 = vmatpush1.bf16.msra.mxu1 %v3352_v36  ;;  %v3439_v35 = vld [vmem:[#allocation2 + $0x6a0] ss:$16 sps:$4 sm:$0xff]   ;;  %v3442_v36 = vld [vmem:[#allocation2 + $0x6a8] ss:$16 sps:$4 sm:$0xff]  }
 0x1ea   :  { %1562 = vmatprep.subr.bf16.mxu0 %v3357_v9  ;;  %1648 = vmatprep.subr.bf16.mxu1 %v3360_v37  ;;  %v3447_v9 = vld [vmem:[#allocation2 + $0x6c4] ss:$16 sps:$4 sm:$0xff]   ;;  %v3450_v37 = vld [vmem:[#allocation2 + $0x6cc] ss:$16 sps:$4 sm:$0xff]  }
 0x1ed   :  { %1563 = vmatpush1.bf16.msra.mxu0 %v3355_v38  ;;  %1649 = vmatpush1.bf16.msra.mxu1 %v3358_v39  ;;  %v3445_v38 = vld [vmem:[#allocation2 + $0x6c0] ss:$16 sps:$4 sm:$0xff]   ;;  %v3448_v39 = vld [vmem:[#allocation2 + $0x6c8] ss:$16 sps:$4 sm:$0xff]  }
 0x1ee   :  { %1564 = vmatprep.subr.bf16.mxu0 %v3363_v40  ;;  %1650 = vmatprep.subr.bf16.mxu1 %v3366_v41  ;;  %v3453_v40 = vld [vmem:[#allocation2 + $0x6e4] ss:$16 sps:$4 sm:$0xff]   ;;  %v3456_v41 = vld [vmem:[#allocation2 + $0x6ec] ss:$16 sps:$4 sm:$0xff]  }
 0x1f1   :  { %1565 = vmatpush1.bf16.msra.mxu0 %v3361_v42  ;;  %1651 = vmatpush1.bf16.msra.mxu1 %v3364_v43  ;;  %v3451_v42 = vld [vmem:[#allocation2 + $0x6e0] ss:$16 sps:$4 sm:$0xff]   ;;  %v3454_v43 = vld [vmem:[#allocation2 + $0x6e8] ss:$16 sps:$4 sm:$0xff]  }
 0x1f2   :  { %1566 = vmatprep.subr.bf16.mxu0 %v3369_v44  ;;  %1652 = vmatprep.subr.bf16.mxu1 %v3372_v45  ;;  %v3459_v44 = vld [vmem:[#allocation2 + $0x704] ss:$16 sps:$4 sm:$0xff]   ;;  %v3462_v45 = vld [vmem:[#allocation2 + $0x70c] ss:$16 sps:$4 sm:$0xff]  }
 0x1f5   :  { %1567 = vmatpush1.bf16.msra.mxu0 %v3367_v46  ;;  %1653 = vmatpush1.bf16.msra.mxu1 %v3370_v47  ;;  %v3457_v46 = vld [vmem:[#allocation2 + $0x700] ss:$16 sps:$4 sm:$0xff]   ;;  %v3460_v47 = vld [vmem:[#allocation2 + $0x708] ss:$16 sps:$4 sm:$0xff]  }
 0x1f6   :  { %1568 = vmatprep.subr.bf16.mxu0 %v3375_v48  ;;  %1654 = vmatprep.subr.bf16.mxu1 %v3378_v49  ;;  %v3465_v48 = vld [vmem:[#allocation2 + $0x724] ss:$16 sps:$4 sm:$0xff]   ;;  %v3468_v49 = vld [vmem:[#allocation2 + $0x72c] ss:$16 sps:$4 sm:$0xff]  }
 0x1f9   :  { %1569 = vmatpush1.bf16.msra.mxu0 %v3373_v50  ;;  %1655 = vmatpush1.bf16.msra.mxu1 %v3376_v51  ;;  %v3463_v50 = vld [vmem:[#allocation2 + $0x720] ss:$16 sps:$4 sm:$0xff]   ;;  %v3466_v51 = vld [vmem:[#allocation2 + $0x728] ss:$16 sps:$4 sm:$0xff]  }
 0x1fa   :  { %1570 = vmatprep.subr.bf16.mxu0 %v3381_v52  ;;  %1656 = vmatprep.subr.bf16.mxu1 %v3384_v53  ;;  %v3471_v52 = vld [vmem:[#allocation2 + $0x744] ss:$16 sps:$4 sm:$0xff]   ;;  %v3474_v53 = vld [vmem:[#allocation2 + $0x74c] ss:$16 sps:$4 sm:$0xff]  }
 0x1fd   :  { %1571 = vmatpush1.bf16.msra.mxu0 %v3379_v54  ;;  %1657 = vmatpush1.bf16.msra.mxu1 %v3382_v55  ;;  %v3469_v54 = vld [vmem:[#allocation2 + $0x740] ss:$16 sps:$4 sm:$0xff]   ;;  %v3472_v55 = vld [vmem:[#allocation2 + $0x748] ss:$16 sps:$4 sm:$0xff]  }
 0x1fe   :  { %1572 = vmatprep.subr.bf16.mxu0 %v3387_v56  ;;  %1658 = vmatprep.subr.bf16.mxu1 %v3390_v57  ;;  %v3477_v56 = vld [vmem:[#allocation2 + $0x764] ss:$16 sps:$4 sm:$0xff]   ;;  %v3480_v57 = vld [vmem:[#allocation2 + $0x76c] ss:$16 sps:$4 sm:$0xff]  }
 0x201   :  { %1573 = vmatpush1.bf16.msra.mxu0 %v3385_v58  ;;  %1659 = vmatpush1.bf16.msra.mxu1 %v3388_v59  ;;  %v3475_v58 = vld [vmem:[#allocation2 + $0x760] ss:$16 sps:$4 sm:$0xff]   ;;  %v3478_v59 = vld [vmem:[#allocation2 + $0x768] ss:$16 sps:$4 sm:$0xff]  }
 0x202   :  { %1574 = vmatprep.subr.bf16.mxu0 %v3393_v60  ;;  %1660 = vmatprep.subr.bf16.mxu1 %v3396_v61  ;;  %v3483_v60 = vld [vmem:[#allocation2 + $0x784] ss:$16 sps:$4 sm:$0xff]   ;;  %v3486_v61 = vld [vmem:[#allocation2 + $0x78c] ss:$16 sps:$4 sm:$0xff]  }
 0x205   :  { %1575 = vmatpush1.bf16.msra.mxu0 %v3391_v62  ;;  %1661 = vmatpush1.bf16.msra.mxu1 %v3394_v63  ;;  %v3481_v62 = vld [vmem:[#allocation2 + $0x780] ss:$16 sps:$4 sm:$0xff]   ;;  %v3484_v63 = vld [vmem:[#allocation2 + $0x788] ss:$16 sps:$4 sm:$0xff]  }
 0x206   :  { %1576 = vmatprep.subr.bf16.mxu0 %v3399_v0  ;;  %1662 = vmatprep.subr.bf16.mxu1 %v3402_v2  ;;  %v3489_v0 = vld [vmem:[#allocation2 + $0x7a4] ss:$16 sps:$4 sm:$0xff]   ;;  %v3492_v2 = vld [vmem:[#allocation2 + $0x7ac] ss:$16 sps:$4 sm:$0xff]  }
 0x209   :  { %1577 = vmatpush1.bf16.msra.mxu0 %v3397_v3  ;;  %1663 = vmatpush1.bf16.msra.mxu1 %v3400_v4  ;;  %v3487_v3 = vld [vmem:[#allocation2 + $0x7a0] ss:$16 sps:$4 sm:$0xff]   ;;  %v3490_v4 = vld [vmem:[#allocation2 + $0x7a8] ss:$16 sps:$4 sm:$0xff]  }
 0x20a   :  { %1578 = vmatprep.subr.bf16.mxu0 %v3405_v5  ;;  %1664 = vmatprep.subr.bf16.mxu1 %v3408_v6  ;;  %v3495_v5 = vld [vmem:[#allocation2 + $0x7c4] ss:$16 sps:$4 sm:$0xff]   ;;  %v3498_v6 = vld [vmem:[#allocation2 + $0x7cc] ss:$16 sps:$4 sm:$0xff]  }
 0x20d   :  { %1579 = vmatpush1.bf16.msra.mxu0 %v3403_v7  ;;  %1665 = vmatpush1.bf16.msra.mxu1 %v3406_v8  ;;  %v3493_v7 = vld [vmem:[#allocation2 + $0x7c0] ss:$16 sps:$4 sm:$0xff]   ;;  %v3496_v8 = vld [vmem:[#allocation2 + $0x7c8] ss:$16 sps:$4 sm:$0xff]  }
 0x20e   :  { %2494 = vmatprep.subr.bf16.mxu0 %v3411_v10  ;;  %2580 = vmatprep.subr.bf16.mxu1 %v3414_v11  ;;  %v3501_v10 = vld [vmem:[#allocation2 + $0x7e4] ss:$16 sps:$4 sm:$0xff]   ;;  %v3504_v11 = vld [vmem:[#allocation2 + $0x7ec] ss:$16 sps:$4 sm:$0xff]  }
 0x210   :  { %1581 = vmatmul.mubr.bf16.vlgmr.msra.gmra.mrb[4].mxu0 %v3738_v1  ;;  %1667 = vmatmul.mubr.bf16.vlgmr.msra.gmra.mrb[4].mxu1 %v3738_v1  ;;  %v3430_v1 = vld [vmem:[#allocation2 + $0x668] ss:$16 sps:$4 sm:$0xff]  }
 0x211   :  { %2495 = vmatpush1.bf16.msra.mxu0 %v3409_v12  ;;  %2581 = vmatpush1.bf16.msra.mxu1 %v3412_v13  ;;  %v3499_v12 = vld [vmem:[#allocation2 + $0x7e0] ss:$16 sps:$4 sm:$0xff]   ;;  %v3502_v13 = vld [vmem:[#allocation2 + $0x7e8] ss:$16 sps:$4 sm:$0xff]  }
 0x212   :  { %2496 = vmatprep.subr.bf16.mxu0 %v3417_v14  ;;  %2582 = vmatprep.subr.bf16.mxu1 %v3420_v15  ;;  %v3507_v14 = vld [vmem:[#allocation2 + $0x804] ss:$16 sps:$4 sm:$0xff]   ;;  %v3510_v15 = vld [vmem:[#allocation2 + $0x80c] ss:$16 sps:$4 sm:$0xff]  }
 0x215   :  { %2497 = vmatpush1.bf16.msra.mxu0 %v3415_v16  ;;  %2583 = vmatpush1.bf16.msra.mxu1 %v3418_v17  ;;  %v69_v16 = vld [vmem:[#allocation4 + $0x1] ss:$8 sm:$0xf] }
 0x216   :  { %2498 = vmatprep.subr.bf16.mxu0 %v3423_v18  ;;  %2584 = vmatprep.subr.bf16.mxu1 %v3426_v19  ;;  %v848_v17 = vrot.slane %v69_v16, %v3724_v26  ;;  %v856_v18 = vrot.slane %v69_v16, %v3726_v27  ;;  %v852_v19 = vrot.slane %v69_v16, %v3728_v29 }
 0x219   :  { %2499 = vmatpush1.bf16.msra.mxu0 %v3421_v20  ;;  %2585 = vmatpush1.bf16.msra.mxu1 %v3424_v21  ;;  %v860_v20 = vrot.slane %v69_v16, %v3730_v30  ;;  %v3540_v16 = vld [vmem:[#allocation2 + $0x8ac] ss:$16 sps:$4 sm:$0xff]  }
 0x21a   :  { %2500 = vmatprep.subr.bf16.mxu0 %v3429_v22  ;;  %2586 = vmatprep.subr.bf16.mxu1 %v3432_v23 }
 0x21d   :  { %2501 = vmatpush1.bf16.msra.mxu0 %v3427_v24  ;;  %2587 = vmatpush1.bf16.msra.mxu1 %v3430_v1 }
 0x21e   :  { %2502 = vmatprep.subr.bf16.mxu0 %v3435_v25  ;;  %2588 = vmatprep.subr.bf16.mxu1 %v3438_v28 }
 0x221   :  { %2503 = vmatpush1.bf16.msra.mxu0 %v3433_v31  ;;  %2589 = vmatpush1.bf16.msra.mxu1 %v3436_v32 }
 0x222   :  { %2504 = vmatprep.subr.bf16.mxu0 %v3441_v33  ;;  %2590 = vmatprep.subr.bf16.mxu1 %v3444_v34 }
 0x225   :  { %2505 = vmatpush1.bf16.msra.mxu0 %v3439_v35  ;;  %2591 = vmatpush1.bf16.msra.mxu1 %v3442_v36 }
 0x226   :  { %2506 = vmatprep.subr.bf16.mxu0 %v3447_v9  ;;  %2592 = vmatprep.subr.bf16.mxu1 %v3450_v37 }
 0x229   :  { %2507 = vmatpush1.bf16.msra.mxu0 %v3445_v38  ;;  %2593 = vmatpush1.bf16.msra.mxu1 %v3448_v39 }
 0x22a   :  { %2508 = vmatprep.subr.bf16.mxu0 %v3453_v40  ;;  %2594 = vmatprep.subr.bf16.mxu1 %v3456_v41 }
 0x22d   :  { %2509 = vmatpush1.bf16.msra.mxu0 %v3451_v42  ;;  %2595 = vmatpush1.bf16.msra.mxu1 %v3454_v43 }
 0x22e   :  { %2510 = vmatprep.subr.bf16.mxu0 %v3459_v44  ;;  %2596 = vmatprep.subr.bf16.mxu1 %v3462_v45 }
 0x231   :  { %2511 = vmatpush1.bf16.msra.mxu0 %v3457_v46  ;;  %2597 = vmatpush1.bf16.msra.mxu1 %v3460_v47 }
 0x232   :  { %2512 = vmatprep.subr.bf16.mxu0 %v3465_v48  ;;  %2598 = vmatprep.subr.bf16.mxu1 %v3468_v49 }
 0x235   :  { %2513 = vmatpush1.bf16.msra.mxu0 %v3463_v50  ;;  %2599 = vmatpush1.bf16.msra.mxu1 %v3466_v51 }
 0x236   :  { %2514 = vmatprep.subr.bf16.mxu0 %v3471_v52  ;;  %2600 = vmatprep.subr.bf16.mxu1 %v3474_v53 }
 0x239   :  { %2515 = vmatpush1.bf16.msra.mxu0 %v3469_v54  ;;  %2601 = vmatpush1.bf16.msra.mxu1 %v3472_v55 }
 0x23a   :  { %2516 = vmatprep.subr.bf16.mxu0 %v3477_v56  ;;  %2602 = vmatprep.subr.bf16.mxu1 %v3480_v57 }
 0x23d   :  { %2517 = vmatpush1.bf16.msra.mxu0 %v3475_v58  ;;  %2603 = vmatpush1.bf16.msra.mxu1 %v3478_v59  ;;  %v3505_v58 = vld [vmem:[#allocation2 + $0x800] ss:$16 sps:$4 sm:$0xff]   ;;  %v3508_v59 = vld [vmem:[#allocation2 + $0x808] ss:$16 sps:$4 sm:$0xff]  }
 0x23e   :  { %2518 = vmatprep.subr.bf16.mxu0 %v3483_v60  ;;  %2604 = vmatprep.subr.bf16.mxu1 %v3486_v61  ;;  %v3513_v61 = vld [vmem:[#allocation2 + $0x824] ss:$16 sps:$4 sm:$0xff]  }
 0x241   :  { %2519 = vmatpush1.bf16.msra.mxu0 %v3481_v62  ;;  %2605 = vmatpush1.bf16.msra.mxu1 %v3484_v63  ;;  %v3516_v62 = vld [vmem:[#allocation2 + $0x82c] ss:$16 sps:$4 sm:$0xff]   ;;  %v3511_v63 = vld [vmem:[#allocation2 + $0x820] ss:$16 sps:$4 sm:$0xff]  }
 0x242   :  { %2520 = vmatprep.subr.bf16.mxu0 %v3489_v0  ;;  %2606 = vmatprep.subr.bf16.mxu1 %v3492_v2  ;;  %v3514_v0 = vld [vmem:[#allocation2 + $0x828] ss:$16 sps:$4 sm:$0xff]   ;;  %v3519_v2 = vld [vmem:[#allocation2 + $0x844] ss:$16 sps:$4 sm:$0xff]  }
 0x245   :  { %2521 = vmatpush1.bf16.msra.mxu0 %v3487_v3  ;;  %2607 = vmatpush1.bf16.msra.mxu1 %v3490_v4  ;;  %v3522_v3 = vld [vmem:[#allocation2 + $0x84c] ss:$16 sps:$4 sm:$0xff]   ;;  %v3517_v4 = vld [vmem:[#allocation2 + $0x840] ss:$16 sps:$4 sm:$0xff]  }
 0x246   :  { %2522 = vmatprep.subr.bf16.mxu0 %v3495_v5  ;;  %2608 = vmatprep.subr.bf16.mxu1 %v3498_v6  ;;  %v3520_v5 = vld [vmem:[#allocation2 + $0x848] ss:$16 sps:$4 sm:$0xff]   ;;  %v3525_v6 = vld [vmem:[#allocation2 + $0x864] ss:$16 sps:$4 sm:$0xff]  }
 0x249   :  { %2523 = vmatpush1.bf16.msra.mxu0 %v3493_v7  ;;  %2609 = vmatpush1.bf16.msra.mxu1 %v3496_v8  ;;  %v3528_v7 = vld [vmem:[#allocation2 + $0x86c] ss:$16 sps:$4 sm:$0xff]   ;;  %v3523_v8 = vld [vmem:[#allocation2 + $0x860] ss:$16 sps:$4 sm:$0xff]  }
 0x24a   :  { %2524 = vmatprep.subr.bf16.mxu0 %v3501_v10  ;;  %2610 = vmatprep.subr.bf16.mxu1 %v3504_v11  ;;  %v3526_v10 = vld [vmem:[#allocation2 + $0x868] ss:$16 sps:$4 sm:$0xff]   ;;  %v3531_v11 = vld [vmem:[#allocation2 + $0x884] ss:$16 sps:$4 sm:$0xff]  }
 0x24d   :  { %2525 = vmatpush1.bf16.msra.mxu0 %v3499_v12  ;;  %2611 = vmatpush1.bf16.msra.mxu1 %v3502_v13  ;;  %v3534_v12 = vld [vmem:[#allocation2 + $0x88c] ss:$16 sps:$4 sm:$0xff]   ;;  %v3529_v13 = vld [vmem:[#allocation2 + $0x880] ss:$16 sps:$4 sm:$0xff]  }
 0x24e   :  { %2537 = vmatprep.subr.bf16.mxu0 %v3507_v14  ;;  %2623 = vmatprep.subr.bf16.mxu1 %v3510_v15  ;;  %v3532_v14 = vld [vmem:[#allocation2 + $0x888] ss:$16 sps:$4 sm:$0xff]   ;;  %v3537_v15 = vld [vmem:[#allocation2 + $0x8a4] ss:$16 sps:$4 sm:$0xff]  }
 0x2e3   :  { %v1582_v21 = vpop.f32.mrb[4].mxu0  ;;  %v1668_v22 = vpop.f32.mrb[4].mxu1 }
 0x2e4   :  { %v3068_v23 = vadd.f32 %v1582_v21, %v848_v17  ;;  %v3072_v24 = vadd.f32 %v1668_v22, %v856_v18  ;;  %v1584_v1 = vpop.f32.mrb[5].mxu0  ;;  %v1670_v25 = vpop.f32.mrb[5].mxu1  ;;  %v3541_v21 = vld [vmem:[#allocation2 + $0x8c0] ss:$16 sps:$4 sm:$0xff]   ;;  %v3544_v22 = vld [vmem:[#allocation2 + $0x8c8] ss:$16 sps:$4 sm:$0xff]  }
 0x2e5   :  { %v3069_v28 = vadd.f32 %v1584_v1, %v852_v19  ;;  %v3073_v31 = vadd.f32 %v1670_v25, %v860_v20  ;;  %v1586_v32 = vpop.f32.mrb[6].mxu0  ;;  %v1672_v33 = vpop.f32.mrb[6].mxu1  ;;  %v3547_v1 = vld [vmem:[#allocation2 + $0x8e0] ss:$16 sps:$4 sm:$0xff]   ;;  %v3550_v25 = vld [vmem:[#allocation2 + $0x8e8] ss:$16 sps:$4 sm:$0xff]  }
 0x2e6   :  { %vm1677_vm11 = vcmp.gt.f32.partialorder %v3068_v23, 0.0  ;;  %v1685_v34 = vmul.f32 0.2, %v3068_v23  ;;  %vm1679_vm12 = vcmp.gt.f32.partialorder %v3072_v24, 0.0  ;;  %v1687_v35 = vmul.f32 0.2, %v3072_v24 }
 0x2e7   :  { %vm1678_vm13 = vcmp.gt.f32.partialorder %v3069_v28, 0.0  ;;  %v1686_v36 = vmul.f32 0.2, %v3069_v28  ;;  %vm1680_vm14 = vcmp.gt.f32.partialorder %v3073_v31, 0.0  ;;  %v1688_v9 = vmul.f32 0.2, %v3073_v31 }
 0x2e8   :  { %v3070_v37 = vadd.f32 %v1586_v32, %v848_v17  ;;  %v3074_v38 = vadd.f32 %v1672_v33, %v856_v18  ;;  %v1588_v39 = vpop.f32.mrb[7].mxu0  ;;  %v1674_v40 = vpop.f32.mrb[7].mxu1  ;;  %v1693_v41 = vsel %vm1677_vm11, %v3068_v23, %v1685_v34  ;;  %v1695_v42 = vsel %vm1679_vm12, %v3072_v24, %v1687_v35  ;;  %v3535_v17 = vld [vmem:[#allocation2 + $0x8a0] ss:$16 sps:$4 sm:$0xff]   ;;  %v3538_v18 = vld [vmem:[#allocation2 + $0x8a8] ss:$16 sps:$4 sm:$0xff]  }
 0x2e9   :  { %v3071_v43 = vadd.f32 %v1588_v39, %v852_v19  ;;  %v3075_v44 = vadd.f32 %v1674_v40, %v860_v20  ;;  %v1694_v51 = vsel %vm1678_vm13, %v3069_v28, %v1686_v36  ;;  %v1696_v52 = vsel %vm1680_vm14, %v3073_v31, %v1688_v9  ;;  %v3543_v19 = vld [vmem:[#allocation2 + $0x8c4] ss:$16 sps:$4 sm:$0xff]   ;;  %v3546_v20 = vld [vmem:[#allocation2 + $0x8cc] ss:$16 sps:$4 sm:$0xff]   ;;  %v3553_v32 = vld [vmem:[#allocation2 + $0x900] ss:$16 sps:$4 sm:$0xff]  }
 0x2ea   :  { %vm1681_vm15 = vcmp.gt.f32.partialorder %v3070_v37, 0.0  ;;  %v1689_v45 = vmul.f32 0.2, %v3070_v37  ;;  %vm1683_vm0 = vcmp.gt.f32.partialorder %v3074_v38, 0.0  ;;  %v1691_v46 = vmul.f32 0.2, %v3074_v38 }
 0x2eb   :  { %vm1682_vm1 = vcmp.gt.f32.partialorder %v3071_v43, 0.0  ;;  %v1690_v47 = vmul.f32 0.2, %v3071_v43  ;;  %vm1684_vm2 = vcmp.gt.f32.partialorder %v3075_v44, 0.0  ;;  %v1692_v48 = vmul.f32 0.2, %v3075_v44 }
 0x2ec   :  { %v1697_v49 = vsel %vm1681_vm15, %v3070_v37, %v1689_v45  ;;  %v1699_v50 = vsel %vm1683_vm0, %v3074_v38, %v1691_v46  ;;  %v3549_v23 = vld [vmem:[#allocation2 + $0x8e4] ss:$16 sps:$4 sm:$0xff]   ;;  %v3552_v24 = vld [vmem:[#allocation2 + $0x8ec] ss:$16 sps:$4 sm:$0xff]   ;;  %v3556_v33 = vld [vmem:[#allocation2 + $0x908] ss:$16 sps:$4 sm:$0xff]  }
 0x2ed   :  { %v1701_v53 = vpack.c.bf16 %v1697_v49, %v1693_v41  ;;  %v3748_v54 = vpack.c.bf16 %v1699_v50, %v1695_v42  ;;  %v1698_v55 = vsel %vm1682_vm1, %v3071_v43, %v1690_v47  ;;  %v1700_v56 = vsel %vm1684_vm2, %v3075_v44, %v1692_v48  ;;  %v3555_v28 = vld [vmem:[#allocation2 + $0x904] ss:$16 sps:$4 sm:$0xff]   ;;  %v3558_v31 = vld [vmem:[#allocation2 + $0x90c] ss:$16 sps:$4 sm:$0xff]   ;;  %v3559_v36 = vld [vmem:[#allocation2 + $0x920] ss:$16 sps:$4 sm:$0xff]  }
 0x2ee   :  { %v1702_v57 = vpack.c.bf16 %v1698_v55, %v1694_v51  ;;  %v1704_v60 = vpack.c.bf16 %v1700_v56, %v1696_v52  ;;  %v3561_v34 = vld [vmem:[#allocation2 + $0x924] ss:$16 sps:$4 sm:$0xff]   ;;  %v3564_v35 = vld [vmem:[#allocation2 + $0x92c] ss:$16 sps:$4 sm:$0xff]   ;;  %v3562_v9 = vld [vmem:[#allocation2 + $0x928] ss:$16 sps:$4 sm:$0xff]  }
 0x2ef   :  { %v3567_v37 = vld [vmem:[#allocation2 + $0x944] ss:$16 sps:$4 sm:$0xff]   ;;  %v3570_v38 = vld [vmem:[#allocation2 + $0x94c] ss:$16 sps:$4 sm:$0xff]   ;;  %v3565_v39 = vld [vmem:[#allocation2 + $0x940] ss:$16 sps:$4 sm:$0xff]  }
 0x2f0   :  { %2526 = vmatprep.mubr.bf16.mxu0 %v1702_v57  ;;  %2612 = vmatprep.mubr.bf16.mxu1 %v1702_v57  ;;  %v3568_v40 = vld [vmem:[#allocation2 + $0x948] ss:$16 sps:$4 sm:$0xff]   ;;  %v3573_v41 = vld [vmem:[#allocation2 + $0x964] ss:$16 sps:$4 sm:$0xff]   ;;  %v3576_v42 = vld [vmem:[#allocation2 + $0x96c] ss:$16 sps:$4 sm:$0xff]  }
 0x2f1   :  { %2527 = vmatmul.mubr.bf16.vlgmr.msra.gmra.mrb[8].mxu0 %v1701_v53  ;;  %2613 = vmatmul.mubr.bf16.vlgmr.msra.gmra.mrb[8].mxu1 %v1701_v53  ;;  %v3571_v43 = vld [vmem:[#allocation2 + $0x960] ss:$16 sps:$4 sm:$0xff]   ;;  %v3574_v44 = vld [vmem:[#allocation2 + $0x968] ss:$16 sps:$4 sm:$0xff]   ;;  %v3579_v45 = vld [vmem:[#allocation2 + $0x984] ss:$16 sps:$4 sm:$0xff]  }
 0x2f2   :  { %2538 = vmatpush1.bf16.msra.mxu0 %v3505_v58  ;;  %2624 = vmatpush1.bf16.msra.mxu1 %v3508_v59  ;;  %v3582_v46 = vld [vmem:[#allocation2 + $0x98c] ss:$16 sps:$4 sm:$0xff]   ;;  %v3577_v47 = vld [vmem:[#allocation2 + $0x980] ss:$16 sps:$4 sm:$0xff]   ;;  %v3580_v48 = vld [vmem:[#allocation2 + $0x988] ss:$16 sps:$4 sm:$0xff]  }
 0x2f3   :  { %2569 = vmatprep.mubr.bf16.mxu0 %v1704_v60  ;;  %2655 = vmatprep.mubr.bf16.mxu1 %v1704_v60  ;;  %v3585_v49 = vld [vmem:[#allocation2 + $0x9a4] ss:$16 sps:$4 sm:$0xff]   ;;  %v3588_v50 = vld [vmem:[#allocation2 + $0x9ac] ss:$16 sps:$4 sm:$0xff]   ;;  %v3583_v51 = vld [vmem:[#allocation2 + $0x9a0] ss:$16 sps:$4 sm:$0xff]  }
 0x2f4   :  { %2539 = vmatprep.subr.bf16.mxu0 %v3513_v61  ;;  %2625 = vmatprep.subr.bf16.mxu1 %v3516_v62  ;;  %v3586_v52 = vld [vmem:[#allocation2 + $0x9a8] ss:$16 sps:$4 sm:$0xff]   ;;  %v3591_v53 = vld [vmem:[#allocation2 + $0x9c4] ss:$16 sps:$4 sm:$0xff]   ;;  %v3594_v55 = vld [vmem:[#allocation2 + $0x9cc] ss:$16 sps:$4 sm:$0xff]  }
 0x2f5   :  { %v3589_v56 = vld [vmem:[#allocation2 + $0x9c0] ss:$16 sps:$4 sm:$0xff]   ;;  %v3592_v57 = vld [vmem:[#allocation2 + $0x9c8] ss:$16 sps:$4 sm:$0xff]   ;;  %v3597_v58 = vld [vmem:[#allocation2 + $0x9e4] ss:$16 sps:$4 sm:$0xff]  }
 0x2f6   :  { %2540 = vmatpush1.bf16.msra.mxu0 %v3511_v63  ;;  %2626 = vmatpush1.bf16.msra.mxu1 %v3514_v0  ;;  %v3600_v59 = vld [vmem:[#allocation2 + $0x9ec] ss:$16 sps:$4 sm:$0xff]   ;;  %v3595_v60 = vld [vmem:[#allocation2 + $0x9e0] ss:$16 sps:$4 sm:$0xff]   ;;  %v3598_v61 = vld [vmem:[#allocation2 + $0x9e8] ss:$16 sps:$4 sm:$0xff]  }
 0x2f7   :  { %2541 = vmatprep.subr.bf16.mxu0 %v3519_v2  ;;  %2627 = vmatprep.subr.bf16.mxu1 %v3522_v3  ;;  %v71_v62 = vld [vmem:[#allocation4 + $0x2] ss:$8 sm:$0xf]  ;;  %vm2731_vm11 = vcmask 7168  }
 0x2f8   :  { %v1837_v63 = vrot.slane %v71_v62, %v3724_v26  ;;  %v1845_v0 = vrot.slane %v71_v62, %v3726_v27  ;;  %v1841_v2 = vrot.slane %v71_v62, %v3728_v29  ;;  %v1849_v3 = vrot.slane %v71_v62, %v3730_v30 }
 0x2fa   :  { %2542 = vmatpush1.bf16.msra.mxu0 %v3517_v4  ;;  %2628 = vmatpush1.bf16.msra.mxu1 %v3520_v5  ;;  %v73_v4 = vld [vmem:[#allocation4 + $0x3] ss:$8 sm:$0xf] }
 0x2fb   :  { %2543 = vmatprep.subr.bf16.mxu0 %v3525_v6  ;;  %2629 = vmatprep.subr.bf16.mxu1 %v3528_v7 }
 0x2fe   :  { %2544 = vmatpush1.bf16.msra.mxu0 %v3523_v8  ;;  %2630 = vmatpush1.bf16.msra.mxu1 %v3526_v10 }
 0x2ff   :  { %2545 = vmatprep.subr.bf16.mxu0 %v3531_v11  ;;  %2631 = vmatprep.subr.bf16.mxu1 %v3534_v12 }
 0x302   :  { %2546 = vmatpush1.bf16.msra.mxu0 %v3529_v13  ;;  %2632 = vmatpush1.bf16.msra.mxu1 %v3532_v14 }
 0x303   :  { %2547 = vmatprep.subr.bf16.mxu0 %v3537_v15  ;;  %2633 = vmatprep.subr.bf16.mxu1 %v3540_v16  ;;  %v2702_v16 = vrot.slane %v73_v4, %v3726_v27 }
 0x306   :  { %2548 = vmatpush1.bf16.msra.mxu0 %v3535_v17  ;;  %2634 = vmatpush1.bf16.msra.mxu1 %v3538_v18  ;;  %v2698_v18 = vrot.slane %v73_v4, %v3728_v29 }
 0x307   :  { %2549 = vmatprep.subr.bf16.mxu0 %v3543_v19  ;;  %2635 = vmatprep.subr.bf16.mxu1 %v3546_v20  ;;  %v2706_v19 = vrot.slane %v73_v4, %v3730_v30 }
 0x30a   :  { %2550 = vmatpush1.bf16.msra.mxu0 %v3541_v21  ;;  %2636 = vmatpush1.bf16.msra.mxu1 %v3544_v22 }
 0x30b   :  { %2551 = vmatprep.subr.bf16.mxu0 %v3549_v23  ;;  %2637 = vmatprep.subr.bf16.mxu1 %v3552_v24 }
 0x30e   :  { %2552 = vmatpush1.bf16.msra.mxu0 %v3547_v1  ;;  %2638 = vmatpush1.bf16.msra.mxu1 %v3550_v25 }
 0x30f   :  { %2553 = vmatprep.subr.bf16.mxu0 %v3555_v28  ;;  %2639 = vmatprep.subr.bf16.mxu1 %v3558_v31 }
 0x312   :  { %2554 = vmatpush1.bf16.msra.mxu0 %v3553_v32  ;;  %2640 = vmatpush1.bf16.msra.mxu1 %v3556_v33 }
 0x313   :  { %2555 = vmatprep.subr.bf16.mxu0 %v3561_v34  ;;  %2641 = vmatprep.subr.bf16.mxu1 %v3564_v35 }
 0x316   :  { %2556 = vmatpush1.bf16.msra.mxu0 %v3559_v36  ;;  %2642 = vmatpush1.bf16.msra.mxu1 %v3562_v9 }
 0x317   :  { %2557 = vmatprep.subr.bf16.mxu0 %v3567_v37  ;;  %2643 = vmatprep.subr.bf16.mxu1 %v3570_v38 }
 0x31a   :  { %2558 = vmatpush1.bf16.msra.mxu0 %v3565_v39  ;;  %2644 = vmatpush1.bf16.msra.mxu1 %v3568_v40 }
 0x31b   :  { %2559 = vmatprep.subr.bf16.mxu0 %v3573_v41  ;;  %2645 = vmatprep.subr.bf16.mxu1 %v3576_v42 }
 0x31e   :  { %2560 = vmatpush1.bf16.msra.mxu0 %v3571_v43  ;;  %2646 = vmatpush1.bf16.msra.mxu1 %v3574_v44 }
 0x31f   :  { %2561 = vmatprep.subr.bf16.mxu0 %v3579_v45  ;;  %2647 = vmatprep.subr.bf16.mxu1 %v3582_v46 }
 0x322   :  { %2562 = vmatpush1.bf16.msra.mxu0 %v3577_v47  ;;  %2648 = vmatpush1.bf16.msra.mxu1 %v3580_v48 }
 0x323   :  { %2563 = vmatprep.subr.bf16.mxu0 %v3585_v49  ;;  %2649 = vmatprep.subr.bf16.mxu1 %v3588_v50 }
 0x326   :  { %2564 = vmatpush1.bf16.msra.mxu0 %v3583_v51  ;;  %2650 = vmatpush1.bf16.msra.mxu1 %v3586_v52 }
 0x327   :  { %2565 = vmatprep.subr.bf16.mxu0 %v3591_v53  ;;  %2651 = vmatprep.subr.bf16.mxu1 %v3594_v55  ;;  %v74_v53 = vld [vmem:[#allocation4 + $0x4] ss:$0 sm:$0xff] }
 0x32a   :  { %2566 = vmatpush1.bf16.msra.mxu0 %v3589_v56  ;;  %2652 = vmatpush1.bf16.msra.mxu1 %v3592_v57 }
 0x32b   :  { %2567 = vmatprep.subr.bf16.mxu0 %v3597_v58  ;;  %2653 = vmatprep.subr.bf16.mxu1 %v3600_v59 }
 0x32e   :  { %2568 = vmatpush1.bf16.msra.mxu0 %v3595_v60  ;;  %2654 = vmatpush1.bf16.msra.mxu1 %v3598_v61 }
 0x331   :  { %2570 = vmatmul.mubr.bf16.vlgmr.msra.gmra.mrb[8].mxu0 %v3748_v54  ;;  %2656 = vmatmul.mubr.bf16.vlgmr.msra.gmra.mrb[8].mxu1 %v3748_v54  ;;  %v2694_v54 = vrot.slane %v73_v4, %v3724_v26 }
 0x404   :  { %v2571_v5 = vpop.f32.mrb[8].mxu0  ;;  %v2657_v6 = vpop.f32.mrb[8].mxu1 }
 0x405   :  { %v3076_v7 = vadd.f32 %v2571_v5, %v1837_v63  ;;  %v3080_v8 = vadd.f32 %v2657_v6, %v1845_v0  ;;  %v2573_v10 = vpop.f32.mrb[9].mxu0  ;;  %v2659_v11 = vpop.f32.mrb[9].mxu1 }
 0x406   :  { %v3077_v12 = vadd.f32 %v2573_v10, %v1841_v2  ;;  %v3081_v13 = vadd.f32 %v2659_v11, %v1849_v3  ;;  %v2575_v14 = vpop.f32.mrb[10].mxu0  ;;  %v2661_v15 = vpop.f32.mrb[10].mxu1 }
 0x407   :  { %vm2666_vm3 = vcmp.gt.f32.partialorder %v3076_v7, 0.0  ;;  %v2674_v17 = vmul.f32 0.2, %v3076_v7  ;;  %vm2668_vm4 = vcmp.gt.f32.partialorder %v3080_v8, 0.0  ;;  %v2676_v20 = vmul.f32 0.2, %v3080_v8 }
 0x408   :  { %vm2667_vm5 = vcmp.gt.f32.partialorder %v3077_v12, 0.0  ;;  %v2675_v21 = vmul.f32 0.2, %v3077_v12  ;;  %vm2669_vm6 = vcmp.gt.f32.partialorder %v3081_v13, 0.0  ;;  %v2677_v22 = vmul.f32 0.2, %v3081_v13 }
 0x409   :  { %v3078_v23 = vadd.f32 %v2575_v14, %v1837_v63  ;;  %v3082_v24 = vadd.f32 %v2661_v15, %v1845_v0  ;;  %v2577_v1 = vpop.f32.mrb[11].mxu0  ;;  %v2663_v25 = vpop.f32.mrb[11].mxu1  ;;  %v2682_v26 = vsel %vm2666_vm3, %v3076_v7, %v2674_v17  ;;  %v2684_v34 = vsel %vm2668_vm4, %v3080_v8, %v2676_v20 }
 0x40a   :  { %v2683_v28 = vsel %vm2667_vm5, %v3077_v12, %v2675_v21  ;;  %v3079_v31 = vadd.f32 %v2577_v1, %v1841_v2  ;;  %v3083_v27 = vadd.f32 %v2663_v25, %v1849_v3  ;;  %v2711_v36 = vmul.f32 %v2694_v54, %v2682_v26 }
 0x40b   :  { %vm2670_vm7 = vcmp.gt.f32.partialorder %v3078_v23, 0.0  ;;  %v2678_v32 = vmul.f32 0.2, %v3078_v23  ;;  %vm2672_vm8 = vcmp.gt.f32.partialorder %v3082_v24, 0.0  ;;  %v2680_v29 = vmul.f32 0.2, %v3082_v24 }
 0x40c   :  { %vm2671_vm9 = vcmp.gt.f32.partialorder %v3079_v31, 0.0  ;;  %v2679_v30 = vmul.f32 0.2, %v3079_v31  ;;  %v2681_v33 = vmul.f32 0.2, %v3083_v27  ;;  %vm2673_vm10 = vcmp.gt.f32.partialorder %v3083_v27, 0.0 }
 0x40d   :  { %v2686_v35 = vsel %vm2670_vm7, %v3078_v23, %v2678_v32  ;;  %v2712_v9 = vmul.f32 %v2698_v18, %v2683_v28  ;;  %v2688_v38 = vsel %vm2672_vm8, %v3082_v24, %v2680_v29  ;;  %v2685_v40 = vsel %vm2669_vm6, %v3081_v13, %v2677_v22 }
 0x40e   :  { %v2715_v37 = vmul.f32 %v2694_v54, %v2686_v35  ;;  %v2687_v39 = vsel %vm2671_vm9, %v3079_v31, %v2679_v30  ;;  %v2713_v42 = vmul.f32 %v2702_v16, %v2684_v34  ;;  %v2689_v44 = vsel %vm2673_vm10, %v3083_v27, %v2681_v33 }
 0x40f   :  { %v2716_v41 = vmul.f32 %v2698_v18, %v2687_v39  ;;  %v2719_v43 = vadd.f32 %v2712_v9, %v2711_v36  ;;  %v2714_v45 = vmul.f32 %v2706_v19, %v2685_v40  ;;  %v2717_v47 = vmul.f32 %v2702_v16, %v2688_v38 }
 0x410   :  { %v2718_v50 = vmul.f32 %v2706_v19, %v2689_v44 }
 0x411   :  { %v2720_v46 = vadd.f32 %v2719_v43, %v2713_v42  ;;  %v2724_v48 = vadd.f32 %v2716_v41, %v2715_v37 }
 0x413   :  { %v2721_v49 = vadd.f32 %v2720_v46, %v2714_v45  ;;  %v2725_v51 = vadd.f32 %v2724_v48, %v2717_v47 }
 0x415   :  { %2722 = vadd.xlane.f32.xlu1 %v2721_v49  ;;  %v2726_v52 = vadd.f32 %v2725_v51, %v2718_v50 }
 0x419   :  { %2727 = vadd.xlane.f32.xlu1 %v2726_v52 }
 0x4a2   :  { %v2723_v55 = vpop.xlane.xlu1 %2722 }
 0x4a3   :  { %v2729_v56 = vadd.f32 %v2723_v55, %v74_v53 }
 0x4a5   :  { %2732 = vst.msk [vmem:[%s3772_s4] sm:$0xff] %vm2731_vm11, %v2729_v56 }
 0x4a6   :  { %v2728_v57 = vpop.xlane.xlu1 %2727 }
 0x4a7   :  { %v2730_v58 = vadd.f32 %v2728_v57, %v74_v53 }
 0x4a9   :  { %2733 = vst.msk [vmem:[%s3772_s4 + $0x8] sm:$0xff] %vm2731_vm11, %v2730_v58 }
 0x4aa   :  { %2738 = vsyncpa [#allocation3], 1 }
 0x4ab   :  { %2739 = vsyncpa [#allocation5], 1 }

</bundles_post_ra>
